<compile_context>
chip_gen: v7x
topology: tpu7x:2x2x1
jax: 0.10.0
libtpu: 0.0.40
codegen_flags: <defaults>
</compile_context>

<pallas_src>
import functools

import jax
import jax.numpy as jnp
from jax.experimental import pallas as pl
from jax.experimental.pallas import tpu as pltpu


def _make_mlp_kernel(num_linears: int, in_dim: int, hidden: int, out_dim: int,
                     act_dtype):
    """Fused-MLP kernel. Activations are (features, batch_tile): batch on lanes."""
    k = num_linears
    H = hidden

    def kernel(x_ref, w0_ref, wh_ref, wl_ref, b_ref, bl_ref, out_ref):
        a_in = x_ref[...].astype(jnp.float32)          # (in_dim, tile) = x.float()

        # ---- layer 0 (linears[0]), f32 weights ------------------------------
        if in_dim < 8:
            # Tiny-K first layer: broadcast FMAs on the VPU instead of paying
            # MXU push/pop latency for a K=3 matmul.
            w0 = w0_ref[...]                           # (H, in_dim) f32
            z = b_ref[0]                               # (H, 1) f32
            for kk in range(in_dim):
                z = z + w0[:, kk:kk + 1] * a_in[kk:kk + 1, :]
        else:
            z = jnp.dot(w0_ref[...], a_in,
                        preferred_element_type=jnp.float32) + b_ref[0]
        # tanh in f32 (EUP); carry the activation in act_dtype (bf16 on v6e/v7x)
        # to halve the vreg footprint and feed the bf16 MXU without extra packs.
        a = jnp.tanh(z).astype(act_dtype)

        # ---- hidden layers linears[1 .. k-2]: MXU, f32 accumulation ---------
        for j in range(k - 2):
            z = jnp.dot(wh_ref[j], a,
                        preferred_element_type=jnp.float32) + b_ref[j + 1]
            a = jnp.tanh(z).astype(act_dtype)

        # ---- linears[-2] applied a SECOND time (mirrors the PyTorch ref) ----
        z = jnp.dot(wh_ref[k - 3], a,
                    preferred_element_type=jnp.float32) + b_ref[k - 2]
        a = jnp.tanh(z)                                # keep f32: feeds f32 final dot

        # ---- final layer linears[-1], f32 weights ----------------------------
        zo = jnp.dot(wl_ref[...], a, preferred_element_type=jnp.float32)
        out_ref[...] = (zo + bl_ref[...]).astype(out_ref.dtype)

    return kernel


def prepare_params(weights, biases, *, use_bf16=True):
    """Casts / stacks torch-layout params once for the kernel.

    weights[i]: (layers[i+1], layers[i])  (torch nn.Linear layout)
    biases[i]:  (layers[i+1],)
    Returns: w0 f32 (H,in), hidden-weight slab (k-2,H,H) in the compute dtype,
             w_last f32 (out,H), hidden-bias slab f32 (k-1,H,1), b_last f32 (out,1).
    """
    k = len(weights)
    H = weights[0].shape[0]
    wdt = jnp.bfloat16 if use_bf16 else jnp.float32
    w0 = jnp.asarray(weights[0], jnp.float32)                        # f32: VPU path
    wh = jnp.stack([jnp.asarray(w, wdt) for w in weights[1:k - 1]])  # (k-2, H, H)
    wl = jnp.asarray(weights[-1], jnp.float32)                       # f32: accuracy
    b_hid = jnp.stack([jnp.asarray(b, jnp.float32).reshape(H, 1)
                       for b in biases[:k - 1]])                     # (k-1, H, 1)
    b_last = jnp.asarray(biases[-1], jnp.float32).reshape(-1, 1)     # (out, 1)
    return w0, wh, wl, b_hid, b_last


def taylor_green_vortex_pinn_forward(x, weights, biases, *, batch_tile=1024,
                                     use_bf16=True):
    """Runs the fused MLP forward pass with a single pallas_call.

    x:       (N, layers[0]) float array
    weights: list of (layers[i+1], layers[i]) arrays (torch layout)
    biases:  list of (layers[i+1],) arrays
    Returns: (N, layers[-1]) float32 array.
    """
    n, in_dim = x.shape
    k = len(weights)
    out_dim = weights[-1].shape[0]
    H = weights[0].shape[0]

    assert k >= 3, "stacked-slab kernel needs at least two hidden layers"
    assert batch_tile % 128 == 0, "batch_tile must be a multiple of 128 (lanes)"
    for w in weights[1:k - 1]:
        assert w.shape == (H, H), "hidden layers must share a uniform width"
    assert weights[-1].shape[1] == H
    # linears[-2] is applied twice (mirrors the PyTorch reference), so it must
    # be square: layers[-2] == layers[-3].
    assert weights[-2].shape[0] == weights[-2].shape[1], (
        "layers[-2] must equal layers[-3] for the double linears[-2] application")

    w0, wh, wl, b_hid, b_last = prepare_params(weights, biases, use_bf16=use_bf16)

    # Layout flip: features on sublanes, batch on lanes (lane-dense stores).
    x_t = jnp.asarray(x, jnp.float32).T                 # (in_dim, N)
    n_pad = pl.cdiv(n, batch_tile) * batch_tile
    if n_pad != n:
        # TODO(synk): this materializes a full padded copy; a ragged last tile
        # (pl.BoundedSlice) would avoid the extra HBM pass for huge non-multiple N.
        x_t = jnp.pad(x_t, ((0, 0), (0, n_pad - n)))

    act_dtype = jnp.bfloat16 if use_bf16 else jnp.float32
    kernel = _make_mlp_kernel(k, in_dim, H, out_dim, act_dtype)
    grid = (n_pad // batch_tile,)

    # Advisory cost hint: matmul flops ((k-1) hidden applications incl. the
    # double linears[-2]), k tanh applications of (H, N), and total HBM bytes.
    flops = 2 * n_pad * (in_dim * H + (k - 1) * H * H + out_dim * H)
    transcendentals = k * H * n_pad
    bytes_accessed = (x_t.size * 4 + out_dim * n_pad * 4 + w0.size * 4
                      + wh.size * wh.dtype.itemsize + wl.size * 4
                      + b_hid.size * 4 + b_last.size * 4)

    out_t = pl.pallas_call(
        kernel,
        out_shape=jax.ShapeDtypeStruct((out_dim, n_pad), jnp.float32),
        grid_spec=pltpu.PrefetchScalarGridSpec(
            num_scalar_prefetch=0,
            grid=grid,
            in_specs=[
                # Batch-tiled input (lane axis).
                pl.BlockSpec((in_dim, batch_tile), lambda i: (0, i)),
                # Grid-invariant params: constant index maps -> DMA'd once, not
                # re-fetched per step; stacked into slabs to cut per-step
                # pipeline bookkeeping (6 operands instead of 9).
                pl.BlockSpec(w0.shape, lambda i: (0, 0)),
                pl.BlockSpec(wh.shape, lambda i: (0, 0, 0)),
                pl.BlockSpec(wl.shape, lambda i: (0, 0)),
                pl.BlockSpec(b_hid.shape, lambda i: (0, 0, 0)),
                pl.BlockSpec(b_last.shape, lambda i: (0, 0)),
            ],
            out_specs=pl.BlockSpec((out_dim, batch_tile), lambda i: (0, i)),
        ),
        compiler_params=pltpu.CompilerParams(
            dimension_semantics=("parallel",),   # shards the batch over v7x's 2 TCs
        ),
        cost_estimate=pl.CostEstimate(flops=flops,
                                      transcendentals=transcendentals,
                                      bytes_accessed=bytes_accessed),
    )(x_t, w0, wh, wl, b_hid, b_last)

    # Back to the caller's (N, out_dim) layout; drop the padded tail.
    return out_t[:, :n].T


def _reference_forward(x, weights, biases):
    """Plain-JAX f32 reference reproducing the PyTorch forward exactly."""
    k = len(weights)
    hp = jax.lax.Precision.HIGHEST
    a = x.astype(jnp.float32)
    for i in range(k - 1):
        a = jnp.tanh(jnp.dot(a, weights[i].T, precision=hp) + biases[i])
    # linears[-2] applied a second time, then the final linear (as in PyTorch).
    a = jnp.tanh(jnp.dot(a, weights[k - 2].T, precision=hp) + biases[k - 2])
    return jnp.dot(a, weights[k - 1].T, precision=hp) + biases[k - 1]


def _init_params(layers, key):
    """nn.Linear-style U(-1/sqrt(fan_in), 1/sqrt(fan_in)) init, torch layout."""
    weights, biases = [], []
    for i in range(len(layers) - 1):
        fan_in, fan_out = layers[i], layers[i + 1]
        key, kw, kb = jax.random.split(key, 3)
        bound = 1.0 / jnp.sqrt(jnp.float32(fan_in))
        weights.append(jax.random.uniform(kw, (fan_out, fan_in), jnp.float32,
                                          minval=-bound, maxval=bound))
        biases.append(jax.random.uniform(kb, (fan_out,), jnp.float32,
                                         minval=-bound, maxval=bound))
    return weights, biases


if __name__ == "__main__":
    # Typical PINN config: inputs (x, y, t) -> hidden(32) x3 -> (u, v, p).
    layers = [3, 32, 32, 32, 3]
    batch_tile = 1024              # live f32 activation = 32 vregs (<64-vreg budget)
    n_points = 8 * batch_tile      # 8 grid steps: pipeline + both v7x TCs get work

    key = jax.random.PRNGKey(0)
    key, kx = jax.random.split(key)
    x = jax.random.uniform(kx, (n_points, layers[0]), jnp.float32,
                           minval=-1.0, maxval=1.0)
    weights, biases = _init_params(layers, key)

    fwd = jax.jit(functools.partial(taylor_green_vortex_pinn_forward,
                                    batch_tile=batch_tile, use_bf16=True))
    out = jax.block_until_ready(fwd(x, weights, biases))

    ref = _reference_forward(x, weights, biases)
    assert out.shape == (n_points, layers[-1])
    # bf16 hidden weights + bf16 activation carry (f32 accumulation, f32 boundary
    # layers) -> compare against the f32 reference with a matching tolerance.
    max_err = float(jnp.max(jnp.abs(out - ref)))
    assert jnp.allclose(out, ref, atol=3e-2, rtol=3e-2), (
        f"mismatch vs reference (max abs err {max_err})")

    print("KERNEL_OK")
</pallas_src>

<mosaic_0001>
module attributes {stable_mosaic.version = 11 : i64} {
  func.func @kernel(%arg0: i32, %arg1: memref<3x1024xf32, #tpu.memory_space<vmem>>, %arg2: memref<32x3xf32, #tpu.memory_space<vmem>>, %arg3: memref<2x32x32xbf16, #tpu.memory_space<vmem>>, %arg4: memref<3x32xf32, #tpu.memory_space<vmem>>, %arg5: memref<3x32x1xf32, #tpu.memory_space<vmem>>, %arg6: memref<3x1xf32, #tpu.memory_space<vmem>>, %arg7: memref<3x1024xf32, #tpu.memory_space<vmem>>) attributes {dimension_semantics = [#tpu.dimension_semantics<parallel>], iteration_bounds = array<i64: 8>, scalar_prefetch = 0 : i64, scratch_operands = 0 : i64, tpu.core_type = #tpu.core_type<tc>, window_params = [{transform_indices = @transform_0, window_bounds = array<i64: 3, 1024>}, {pipeline_mode = #tpu.pipeline_mode<synchronous>, transform_indices = @transform_1, window_bounds = array<i64: 32, 3>}, {pipeline_mode = #tpu.pipeline_mode<synchronous>, transform_indices = @transform_2, window_bounds = array<i64: 2, 32, 32>}, {pipeline_mode = #tpu.pipeline_mode<synchronous>, transform_indices = @transform_3, window_bounds = array<i64: 3, 32>}, {pipeline_mode = #tpu.pipeline_mode<synchronous>, transform_indices = @transform_4, window_bounds = array<i64: 3, 32, 1>}, {pipeline_mode = #tpu.pipeline_mode<synchronous>, transform_indices = @transform_5, window_bounds = array<i64: 3, 1>}, {transform_indices = @transform_6, window_bounds = array<i64: 3, 1024>}]} {
    %c0 = arith.constant 0 : index
    %c0_0 = arith.constant 0 : index
    %0 = vector.load %arg1[%c0, %c0_0] : memref<3x1024xf32, #tpu.memory_space<vmem>>, vector<3x1024xf32>
    %c0_1 = arith.constant 0 : index
    %c0_2 = arith.constant 0 : index
    %1 = vector.load %arg2[%c0_1, %c0_2] : memref<32x3xf32, #tpu.memory_space<vmem>>, vector<32x3xf32>
    %c0_3 = arith.constant 0 : index
    %c0_4 = arith.constant 0 : index
    %c0_5 = arith.constant 0 : index
    %2 = vector.load %arg5[%c0_3, %c0_4, %c0_5] : memref<3x32x1xf32, #tpu.memory_space<vmem>>, vector<1x32x1xf32>
    %3 = vector.shape_cast %2 : vector<1x32x1xf32> to vector<32x1xf32>
    %4 = vector.extract_strided_slice %1 {offsets = [0, 0], sizes = [32, 1], strides = [1, 1]} : vector<32x3xf32> to vector<32x1xf32>
    %5 = vector.extract_strided_slice %0 {offsets = [0, 0], sizes = [1, 1024], strides = [1, 1]} : vector<3x1024xf32> to vector<1x1024xf32>
    %6 = vector.broadcast %4 : vector<32x1xf32> to vector<32x1024xf32>
    %7 = vector.broadcast %5 : vector<1x1024xf32> to vector<32x1024xf32>
    %8 = arith.mulf %6, %7 : vector<32x1024xf32>
    %9 = vector.broadcast %3 : vector<32x1xf32> to vector<32x1024xf32>
    %10 = arith.addf %9, %8 : vector<32x1024xf32>
    %11 = vector.extract_strided_slice %1 {offsets = [0, 1], sizes = [32, 1], strides = [1, 1]} : vector<32x3xf32> to vector<32x1xf32>
    %12 = vector.extract_strided_slice %0 {offsets = [1, 0], sizes = [1, 1024], strides = [1, 1]} : vector<3x1024xf32> to vector<1x1024xf32>
    %13 = vector.broadcast %11 : vector<32x1xf32> to vector<32x1024xf32>
    %14 = vector.broadcast %12 : vector<1x1024xf32> to vector<32x1024xf32>
    %15 = arith.mulf %13, %14 : vector<32x1024xf32>
    %16 = arith.addf %10, %15 : vector<32x1024xf32>
    %17 = vector.extract_strided_slice %1 {offsets = [0, 2], sizes = [32, 1], strides = [1, 1]} : vector<32x3xf32> to vector<32x1xf32>
    %18 = vector.extract_strided_slice %0 {offsets = [2, 0], sizes = [1, 1024], strides = [1, 1]} : vector<3x1024xf32> to vector<1x1024xf32>
    %19 = vector.broadcast %17 : vector<32x1xf32> to vector<32x1024xf32>
    %20 = vector.broadcast %18 : vector<1x1024xf32> to vector<32x1024xf32>
    %21 = arith.mulf %19, %20 : vector<32x1024xf32>
    %22 = arith.addf %16, %21 : vector<32x1024xf32>
    %23 = math.tanh %22 : vector<32x1024xf32>
    %24 = arith.truncf %23 : vector<32x1024xf32> to vector<32x1024xbf16>
    %c0_6 = arith.constant 0 : index
    %c0_7 = arith.constant 0 : index
    %c0_8 = arith.constant 0 : index
    %25 = vector.load %arg3[%c0_6, %c0_7, %c0_8] : memref<2x32x32xbf16, #tpu.memory_space<vmem>>, vector<1x32x32xbf16>
    %26 = vector.shape_cast %25 : vector<1x32x32xbf16> to vector<32x32xbf16>
    %cst = arith.constant dense<0.000000e+00> : vector<32x1024xf32>
    %27 = tpu.matmul %26, %24, %cst {dimension_numbers = #tpu.dot_dimension_numbers<[1], [0], [0], [1], [0, 0, 1, 1], [], []>} : vector<32x32xbf16>, vector<32x1024xbf16>, vector<32x1024xf32> -> vector<32x1024xf32>
    %c1 = arith.constant 1 : index
    %c0_9 = arith.constant 0 : index
    %c0_10 = arith.constant 0 : index
    %28 = vector.load %arg5[%c1, %c0_9, %c0_10] : memref<3x32x1xf32, #tpu.memory_space<vmem>>, vector<1x32x1xf32>
    %29 = vector.shape_cast %28 : vector<1x32x1xf32> to vector<32x1xf32>
    %30 = vector.broadcast %29 : vector<32x1xf32> to vector<32x1024xf32>
    %31 = arith.addf %27, %30 : vector<32x1024xf32>
    %32 = math.tanh %31 : vector<32x1024xf32>
    %33 = arith.truncf %32 : vector<32x1024xf32> to vector<32x1024xbf16>
    %c1_11 = arith.constant 1 : index
    %c0_12 = arith.constant 0 : index
    %c0_13 = arith.constant 0 : index
    %34 = vector.load %arg3[%c1_11, %c0_12, %c0_13] : memref<2x32x32xbf16, #tpu.memory_space<vmem>>, vector<1x32x32xbf16>
    %35 = vector.shape_cast %34 : vector<1x32x32xbf16> to vector<32x32xbf16>
    %cst_14 = arith.constant dense<0.000000e+00> : vector<32x1024xf32>
    %36 = tpu.matmul %35, %33, %cst_14 {dimension_numbers = #tpu.dot_dimension_numbers<[1], [0], [0], [1], [0, 0, 1, 1], [], []>} : vector<32x32xbf16>, vector<32x1024xbf16>, vector<32x1024xf32> -> vector<32x1024xf32>
    %c2 = arith.constant 2 : index
    %c0_15 = arith.constant 0 : index
    %c0_16 = arith.constant 0 : index
    %37 = vector.load %arg5[%c2, %c0_15, %c0_16] : memref<3x32x1xf32, #tpu.memory_space<vmem>>, vector<1x32x1xf32>
    %38 = vector.shape_cast %37 : vector<1x32x1xf32> to vector<32x1xf32>
    %39 = vector.broadcast %38 : vector<32x1xf32> to vector<32x1024xf32>
    %40 = arith.addf %36, %39 : vector<32x1024xf32>
    %41 = math.tanh %40 : vector<32x1024xf32>
    %42 = arith.truncf %41 : vector<32x1024xf32> to vector<32x1024xbf16>
    %c1_17 = arith.constant 1 : index
    %c0_18 = arith.constant 0 : index
    %c0_19 = arith.constant 0 : index
    %43 = vector.load %arg3[%c1_17, %c0_18, %c0_19] : memref<2x32x32xbf16, #tpu.memory_space<vmem>>, vector<1x32x32xbf16>
    %44 = vector.shape_cast %43 : vector<1x32x32xbf16> to vector<32x32xbf16>
    %cst_20 = arith.constant dense<0.000000e+00> : vector<32x1024xf32>
    %45 = tpu.matmul %44, %42, %cst_20 {dimension_numbers = #tpu.dot_dimension_numbers<[1], [0], [0], [1], [0, 0, 1, 1], [], []>} : vector<32x32xbf16>, vector<32x1024xbf16>, vector<32x1024xf32> -> vector<32x1024xf32>
    %c2_21 = arith.constant 2 : index
    %c0_22 = arith.constant 0 : index
    %c0_23 = arith.constant 0 : index
    %46 = vector.load %arg5[%c2_21, %c0_22, %c0_23] : memref<3x32x1xf32, #tpu.memory_space<vmem>>, vector<1x32x1xf32>
    %47 = vector.shape_cast %46 : vector<1x32x1xf32> to vector<32x1xf32>
    %48 = vector.broadcast %47 : vector<32x1xf32> to vector<32x1024xf32>
    %49 = arith.addf %45, %48 : vector<32x1024xf32>
    %50 = math.tanh %49 : vector<32x1024xf32>
    %c0_24 = arith.constant 0 : index
    %c0_25 = arith.constant 0 : index
    %51 = vector.load %arg4[%c0_24, %c0_25] : memref<3x32xf32, #tpu.memory_space<vmem>>, vector<3x32xf32>
    %cst_26 = arith.constant dense<0.000000e+00> : vector<3x1024xf32>
    %52 = tpu.matmul %51, %50, %cst_26 {dimension_numbers = #tpu.dot_dimension_numbers<[1], [0], [0], [1], [0, 0, 1, 1], [], []>} : vector<3x32xf32>, vector<32x1024xf32>, vector<3x1024xf32> -> vector<3x1024xf32>
    %c0_27 = arith.constant 0 : index
    %c0_28 = arith.constant 0 : index
    %53 = vector.load %arg6[%c0_27, %c0_28] : memref<3x1xf32, #tpu.memory_space<vmem>>, vector<3x1xf32>
    %54 = vector.broadcast %53 : vector<3x1xf32> to vector<3x1024xf32>
    %55 = arith.addf %52, %54 : vector<3x1024xf32>
    %c0_29 = arith.constant 0 : index
    %c0_30 = arith.constant 0 : index
    %56 = vector.load %arg7[%c0_29, %c0_30] : memref<3x1024xf32, #tpu.memory_space<vmem>>, vector<3x1024xf32>
    tpu.vector_store %arg7[%c0_29, %c0_30], %55 {strides = array<i32>} : memref<3x1024xf32, #tpu.memory_space<vmem>>, vector<3x1024xf32>,
    return
  }
  func.func @transform_0(%arg0: i32) -> (i32, i32) {
    %c0_i32 = arith.constant 0 : i32
    %c0_i32_0 = arith.constant 0 : i32
    return %c0_i32, %arg0 : i32, i32
  }
  func.func @transform_1(%arg0: i32) -> (i32, i32) {
    %c0_i32 = arith.constant 0 : i32
    %c0_i32_0 = arith.constant 0 : i32
    %c0_i32_1 = arith.constant 0 : i32
    return %c0_i32, %c0_i32_0 : i32, i32
  }
  func.func @transform_2(%arg0: i32) -> (i32, i32, i32) {
    %c0_i32 = arith.constant 0 : i32
    %c0_i32_0 = arith.constant 0 : i32
    %c0_i32_1 = arith.constant 0 : i32
    %c0_i32_2 = arith.constant 0 : i32
    return %c0_i32, %c0_i32_0, %c0_i32_1 : i32, i32, i32
  }
  func.func @transform_3(%arg0: i32) -> (i32, i32) {
    %c0_i32 = arith.constant 0 : i32
    %c0_i32_0 = arith.constant 0 : i32
    %c0_i32_1 = arith.constant 0 : i32
    return %c0_i32, %c0_i32_0 : i32, i32
  }
  func.func @transform_4(%arg0: i32) -> (i32, i32, i32) {
    %c0_i32 = arith.constant 0 : i32
    %c0_i32_0 = arith.constant 0 : i32
    %c0_i32_1 = arith.constant 0 : i32
    %c0_i32_2 = arith.constant 0 : i32
    return %c0_i32, %c0_i32_0, %c0_i32_1 : i32, i32, i32
  }
  func.func @transform_5(%arg0: i32) -> (i32, i32) {
    %c0_i32 = arith.constant 0 : i32
    %c0_i32_0 = arith.constant 0 : i32
    %c0_i32_1 = arith.constant 0 : i32
    return %c0_i32, %c0_i32_0 : i32, i32
  }
  func.func @transform_6(%arg0: i32) -> (i32, i32) {
    %c0_i32 = arith.constant 0 : i32
    %c0_i32_0 = arith.constant 0 : i32
    return %c0_i32, %arg0 : i32, i32
  }
}

</mosaic_0001>

<bundles_post_ra>
// kernel: taylor_green_vortex_pinn_forward.1
= control target key start
LH: loop header
LB: loop body
LE: loop exit
PB: predicated region body
PF: predicated region fallthrough
CT: control target
= control target key end

     0   :  { %11 = vsyncpa [#allocation3], 0  ;;  %s3267_s0 = inlined_call_operand.vmem [shape: f32[3,8192], index: 0, kind: input, shape index: {}]   ;;  %s3268_s1 = inlined_call_operand.vmem [shape: f32[32,3], index: 1, kind: input, shape index: {}]   ;;  %s3269_s2 = inlined_call_operand.vmem [shape: bf16[2,32,32], index: 2, kind: input, shape index: {}]   ;;  %s3270_s3 = inlined_call_operand.vmem [shape: f32[3,32], index: 3, kind: input, shape index: {}]   ;;  %s3271_s4 = inlined_call_operand.vmem [shape: f32[3,32,1], index: 4, kind: input, shape index: {}]   ;;  %s3272_s5 = inlined_call_operand.vmem [shape: f32[3,1], index: 5, kind: input, shape index: {}]   ;;  %s3273_s6 = inlined_call_operand.hbm [shape: f32[3,8192], index: 6, kind: output, shape index: {}]  }
   0x1   :  { %13 = vsyncpa [#allocation3 + $0x1], 0  ;;  %s2550_s21 = smov 0   ;;  %s2552_s22 = smov 0  }
   0x2   :  { %s2554_s23 = smov 0   ;;  %s2556_s24 = smov 0  }
   0x3 LB: > { %s2571_s25 = sadd.s32 4294967295, %s2508_s24   ;;  %s2042_s26 = sadd.s32 4294967294, %s2508_s24   ;;  %s2508_s24 = sphi %s2556_s24, %s3313_s24   ;;  %s2504_s23 = sphi %s2554_s23, %s3312_s23   ;;  %s2500_s22 = sphi %s2552_s22, %s3311_s22   ;;  %s2496_s21 = sphi %s2550_s21, %s3310_s21  }
   0x4   : > { %s2575_s27 = sadd.s32 1, %s2508_s24   ;;  %s157_s28 = sadd.s32 1, %s2504_s23 }
   0x5   : > { %s154_s29 = ssub.s32 %s2508_s24, %s2575_s27  ;;  %p167_p0 = scmp.ne.s32.totalorder %s2504_s23, %s2500_s22 }
   0x6   : > { %p155_p1 = scmp.eq.s32.totalorder %s154_s29, 0  ;;  %p168_p2 = scmp.eq.s32.totalorder %s2571_s25, 7 }
   0x7   : > { %p173_p3 = scmp.ne.s32.totalorder %s2500_s22, %s2496_s21  ;;  %p174_p4 = scmp.eq.s32.totalorder %s2042_s26, 7 }
   0x8   : > { %s2586_s30 = scalar_select %p155_p1, %s2504_s23, %s157_s28  }
   0x9   : > { %p2588_p5 = por %p168_p2, %p167_p0  ;;  %p2592_p6 = por %p174_p4, %p173_p3 }
   0xa   : > { %p2045_p7 = scmp.ge.s32.totalorder %s2508_s24, 1  ;;  %p216_p8 = scmp.lt.s32.totalorder %s2508_s24, 9 }
   0xc   : > { %p217_p9 = pnand %p2045_p7, %p216_p8 }
   0xe   : > { %220 = sbr.rel (%p217_p9) target bundleno = 1200 (0x4b0), region = 44 }
  0x15   : > { %v262_v0 = vld [vmem:[%s3271_s4] sm:$0xff]  ;;  %v3274_v2 = vmov 0   ;;  %v263_v3 = vld [vmem:[%s3271_s4 + $0x8] sm:$0xff]  ;;  %v261_v5 = vld [vmem:[%s3268_s1 + $0x18] sm:$0xff]  ;;  %v2511_v6 = vmov 1   ;;  %v2512_v9 = vmov 2   ;;  %v290_v19 = vlaneseq }
  0x16   : > { %v258_v1 = vld [vmem:[%s3268_s1] sm:$0xff]  ;;  %2175 = vset.pattern.permute.xlu1 %v3274_v2  ;;  %2174 = vset.pattern.permute.xlu0 %v3274_v2  ;;  %v259_v4 = vld [vmem:[%s3268_s1 + $0x8] sm:$0xff]  ;;  %v264_v7 = vld [vmem:[%s3271_s4 + $0x10] sm:$0xff]  ;;  %s2047_s20 = sshll.u32 %s2571_s25, 3  ;;  %vm837_vm0 = vcmask 261120   ;;  %s243_s13 = sand.u32 1, %s2500_s22  }
  0x17   : > { %396 = vperm.xlu1 %2175, %v262_v0   ;;  %268 = vperm.xlu0 %2174, %v258_v1   ;;  %v260_v8 = vld [vmem:[%s3268_s1 + $0x10] sm:$0xff]  ;;  %v265_v10 = vld [vmem:[%s3271_s4 + $0x18] sm:$0xff]  ;;  %v2049_v11 = vld [vmem:[%s3271_s4 + $0x20] sm:$0xff]  ;;  %p247_p10 = scmp.lt.s32.totalorder %s2047_s20, 63  ;;  %v291_v21 = vshrl.u32 %v290_v19, 7  ;;  %s2046_s14 = sshll.u32 %s243_s13, 5 }
  0x18   : > { %876 = vmatprep.mubr.bf16.mxu0 %v3274_v2  ;;  %929 = vmatprep.mubr.bf16.mxu1 %v3274_v2  ;;  %v2050_v12 = vld [vmem:[%s3271_s4 + $0x28] sm:$0xff]  ;;  %v2051_v13 = vld [vmem:[%s3271_s4 + $0x30] sm:$0xff]  ;;  %v2052_v15 = vld [vmem:[%s3271_s4 + $0x38] sm:$0xff]  ;;  %s245_s15 = scalar_lea.vmem [#allocation2], %s2046_s14  ;;  %s2098_s16 = sshll.u32 %s2571_s25, 9 }
  0x19   : > { %v2068_v14 = vld [vmem:[%s3271_s4 + $0x48] sm:$0xff]  ;;  %v2070_v16 = vld [vmem:[%s3271_s4 + $0x58] sm:$0xff]  ;;  %v2067_v17 = vld [vmem:[%s3271_s4 + $0x40] sm:$0xff]  ;;  %s3315_s20 = smov (!%p247_p10, %s2047_s20), 63  ;;  %v292_v22 = vsub.s32 0, %v291_v21  ;;  %v296_v23 = vsub.s32 4, %v291_v21 }
  0x1a   : > { %v2069_v18 = vld [vmem:[%s3271_s4 + $0x50] sm:$0xff]  ;;  %s2048_s12 = sshll.u32 %s3315_s20, 2  ;;  %v1655_v20 = vld [vmem:[%s3272_s5] sm:$0x7]  ;;  %v464_v33 = vsub.s32 1, %v291_v21  ;;  %v468_v34 = vsub.s32 5, %v291_v21  ;;  %s3223_s20 = scalar_lea.hbm %s3273_s6, %s2098_s16 }
  0x1b   : > { %401 = vperm.xlu1 %2175, %v263_v3   ;;  %273 = vperm.xlu0 %2174, %v259_v4   ;;  %s250_s17 = scalar_lea.vmem %s3267_s0, %s2048_s12  ;;  %v616_v38 = vsub.s32 2, %v291_v21  ;;  %v620_v40 = vsub.s32 6, %v291_v21  ;;  %s1969_s26 = scalar_lea.sflag [#allocation3], %s243_s13 }
  0x1c   : > { %v256_v24 = vld [vmem:[%s250_s17 + $0x10] sm:$0x77]  ;;  %v257_v25 = vld [vmem:[%s250_s17 + $0x18] sm:$0x77]  ;;  %v254_v26 = vld [vmem:[%s250_s17] sm:$0x77] }
  0x1d   : > { %v309_v27 = vrot.slane %v256_v24, %v292_v22  ;;  %v255_v28 = vld [vmem:[%s250_s17 + $0x8] sm:$0x77]  ;;  %v313_v29 = vrot.slane %v256_v24, %v296_v23  ;;  %v317_v30 = vrot.slane %v257_v25, %v292_v22  ;;  %v321_v31 = vrot.slane %v257_v25, %v296_v23  ;;  %s1983_s17 = sshll.u32 %s245_s15, 4  ;;  %s2514_s25 = smov [#allocation2]   ;;  %s3225_s17 = int_to_ptr.vmem [resolvable:$true] %s1983_s17 }
  0x1e   : > { %v293_v32 = vrot.slane %v254_v26, %v292_v22  ;;  %v297_v35 = vrot.slane %v254_v26, %v296_v23  ;;  %v301_v36 = vrot.slane %v255_v28, %v292_v22  ;;  %v305_v37 = vrot.slane %v255_v28, %v296_v23  ;;  %s2446_s28 = scalar_lea.vmem %s3225_s17, 512  ;;  %s2450_s29 = sshll.u32 %s2514_s25, 4  ;;  %s2451_s29 = int_to_ptr.vmem [resolvable:$false] %s2450_s29 }
  0x1f   : > { %2176 = vset.pattern.permute.xlu1 %v2511_v6  ;;  %283 = vperm.xlu0 %2174, %v261_v5   ;;  %v2661_v39 = vrot.slane %v309_v27, %v292_v22  ;;  %v2663_v41 = vrot.slane %v313_v29, %v292_v22  ;;  %v2665_v42 = vrot.slane %v317_v30, %v292_v22  ;;  %p2447_p11 = scmp.ne.s32.totalorder %s3225_s17, %s2446_s28  ;;  %s2452_s9 = scalar_lea.vmem %s2451_s29, 1024 }
  0x20   : > { %451 = vperm.xlu1 %2176, %v259_v4   ;;  %v2667_v43 = vrot.slane %v321_v31, %v292_v22  ;;  %v2669_v44 = vrot.slane %v293_v32, %v292_v22  ;;  %v481_v45 = vrot.slane %v256_v24, %v464_v33  ;;  %v489_v46 = vrot.slane %v257_v25, %v464_v33  ;;  %p2453_p0 = scmp.lt.s32.totalorder %s3225_s17, %s2451_s29  ;;  %p2454_p1 = scmp.lt.s32.totalorder %s2452_s9, %s2446_s28 }
  0x21   : > { %v469_v47 = vrot.slane %v254_v26, %v468_v34  ;;  %v477_v48 = vrot.slane %v255_v28, %v468_v34  ;;  %v2671_v49 = vrot.slane %v297_v35, %v292_v22  ;;  %v2673_v50 = vrot.slane %v301_v36, %v292_v22  ;;  %p2448_p12 = pnand %p2447_p11, %p2588_p5 }
  0x22   : > { %v2675_v51 = vrot.slane %v305_v37, %v292_v22  ;;  %v465_v52 = vrot.slane %v254_v26, %v464_v33  ;;  %v633_v53 = vrot.slane %v256_v24, %v616_v38  ;;  %v641_v54 = vrot.slane %v257_v25, %v616_v38  ;;  %p2455_p2 = por %p2454_p1, %p2453_p0 }
  0x23   : > { %406 = vperm.xlu0 %2174, %v264_v7   ;;  %v621_v55 = vrot.slane %v254_v26, %v620_v40  ;;  %v473_v56 = vrot.slane %v255_v28, %v464_v33  ;;  %v629_v57 = vrot.slane %v255_v28, %v620_v40  ;;  %v617_v58 = vrot.slane %v254_v26, %v616_v38  ;;  %p2449_p13 = pneg %p2448_p12 }
  0x24   : > { %2177 = vset.pattern.permute.xlu1 %v3274_v2  ;;  %v625_v59 = vrot.slane %v255_v28, %v616_v38  ;;  %v485_v60 = vrot.slane %v256_v24, %v468_v34  ;;  %v2677_v61 = vrot.slane %v481_v45, %v464_v33  ;;  %v2679_v62 = vrot.slane %v489_v46, %v464_v33 }
  0x25   : > { %278 = vperm.xlu1 %2177, %v260_v8   ;;  %v2681_v63 = vrot.slane %v469_v47, %v464_v33  ;;  %v2683_v0 = vrot.slane %v477_v48, %v464_v33  ;;  %v637_v3 = vrot.slane %v256_v24, %v620_v40  ;;  %v2689_v7 = vrot.slane %v641_v54, %v616_v38  ;;  %p2456_p3 = pnand %p2455_p2, %p2449_p13 }
  0x27   : > { %2179 = vset.pattern.permute.xlu0 %v2511_v6  ;;  %v2708_v21 = vrot.slane %v637_v3, %v616_v38 }
  0x28   : > { %447 = vperm.xlu0 %2179, %v258_v1  }
  0x29   : > { %2178 = vset.pattern.permute.xlu1 %v2512_v9 }
  0x2a   : > { %599 = vperm.xlu1 %2178, %v258_v1   ;;  %v2685_v1 = vrot.slane %v465_v52, %v464_v33 }
  0x2c   : > { %455 = vperm.xlu0 %2179, %v260_v8  }
  0x2e   : > { %603 = vperm.xlu1 %2178, %v259_v4   ;;  %v493_v4 = vrot.slane %v257_v25, %v468_v34 }
  0x30   : > { %2183 = vset.pattern.permute.xlu0 %v2512_v9  ;;  %v2710_v22 = vrot.slane %v493_v4, %v464_v33 }
  0x31   : > { %611 = vperm.xlu0 %2183, %v261_v5  }
  0x32   : > { %2180 = vset.pattern.permute.xlu1 %v3274_v2 }
  0x33   : > { %411 = vperm.xlu1 %2180, %v265_v10  }
  0x35   : > { %2185 = vset.pattern.permute.xlu0 %v3274_v2 }
  0x36   : > { %819 = vperm.xlu0 %2185, %v2051_v13   ;;  %v2697_v13 = vrot.slane %v617_v58, %v616_v38 }
  0x37   : > { %2181 = vset.pattern.permute.xlu1 %v2511_v6  ;;  %v2687_v6 = vrot.slane %v633_v53, %v616_v38 }
  0x38   : > { %459 = vperm.xlu1 %2181, %v261_v5   ;;  %v645_v5 = vrot.slane %v257_v25, %v620_v40 }
  0x3a   : > { %1121 = vperm.xlu0 %2185, %v2068_v14   ;;  %v2699_v14 = vrot.slane %v625_v59, %v616_v38  ;;  %v2712_v23 = vrot.slane %v645_v5, %v616_v38 }
  0x3c   : > { %2182 = vset.pattern.permute.xlu1 %v2512_v9  ;;  %v2693_v9 = vrot.slane %v473_v56, %v464_v33  ;;  %3279 = vst [vmem:[#allocation5_spill] sm:$0xff] %v2712_v23 }
  0x3d   : > { %607 = vperm.xlu1 %2182, %v260_v8   ;;  %v2691_v8 = vrot.slane %v621_v55, %v616_v38 }
  0x3e   : > { %1131 = vperm.xlu0 %2185, %v2070_v16  }
  0x41   : > { %2184 = vset.pattern.permute.xlu1 %v3274_v2 }
  0x42   : > { %809 = vperm.xlu1 %2184, %v2049_v11  }
  0x46   : > { %814 = vperm.xlu1 %2184, %v2050_v12   ;;  %v2695_v12 = vrot.slane %v629_v57, %v616_v38 }
  0x4a   : > { %824 = vperm.xlu1 %2184, %v2052_v15   ;;  %v2701_v15 = vrot.slane %v485_v60, %v464_v33 }
  0x4e   : > { %1116 = vperm.xlu1 %2184, %v2067_v17  }
  0x52   : > { %1126 = vperm.xlu1 %2184, %v2069_v18  }
  0x56   : > { %1658 = vperm.xlu1 %2184, %v1655_v20  }
  0x96   : > { %v397_v10 = vpop.permute.xlu1 %396  ;;  %v269_v11 = vpop.permute.xlu0 %268 }
  0x97   : > { %v366_v16 = vmul.f32 %v2661_v39, %v269_v11  ;;  %v367_v17 = vmul.f32 %v2663_v41, %v269_v11  ;;  %v368_v18 = vmul.f32 %v2665_v42, %v269_v11  ;;  %v369_v19 = vmul.f32 %v2667_v43, %v269_v11 }
  0x98   : > { %v363_v20 = vmul.f32 %v2671_v49, %v269_v11  ;;  %v365_v25 = vmul.f32 %v2675_v51, %v269_v11  ;;  %v362_v26 = vmul.f32 %v2669_v44, %v269_v11  ;;  %v364_v27 = vmul.f32 %v2673_v50, %v269_v11 }
  0x99   : > { %v2714_v24 = vadd.f32 %v397_v10, %v366_v16  ;;  %v2719_v28 = vadd.f32 %v397_v10, %v368_v18  ;;  %v2723_v32 = vadd.f32 %v397_v10, %v367_v17  ;;  %v2725_v33 = vadd.f32 %v397_v10, %v369_v19 }
  0x9a   : > { %v402_v29 = vpop.permute.xlu1 %401  ;;  %v274_v30 = vpop.permute.xlu0 %273  ;;  %v2721_v31 = vadd.f32 %v397_v10, %v363_v20  ;;  %v2735_v48 = vadd.f32 %v397_v10, %v365_v25  ;;  %v2737_v52 = vadd.f32 %v397_v10, %v362_v26  ;;  %v2739_v53 = vadd.f32 %v397_v10, %v364_v27 }
  0x9b   : > { %3280 = vst [vmem:[#allocation6_spill] sm:$0xff] %v2714_v24  ;;  %3281 = vst [vmem:[#allocation7_spill] sm:$0xff] %v2719_v28  ;;  %v374_v34 = vmul.f32 %v2661_v39, %v274_v30  ;;  %v375_v35 = vmul.f32 %v2663_v41, %v274_v30  ;;  %v376_v36 = vmul.f32 %v2665_v42, %v274_v30 }
  0x9c   : > { %3282 = vst [vmem:[#allocation8_spill] sm:$0xff] %v2725_v33  ;;  %v377_v37 = vmul.f32 %v2667_v43, %v274_v30  ;;  %v371_v38 = vmul.f32 %v2671_v49, %v274_v30  ;;  %v373_v40 = vmul.f32 %v2675_v51, %v274_v30  ;;  %v370_v45 = vmul.f32 %v2669_v44, %v274_v30 }
  0x9d   : > { %v372_v46 = vmul.f32 %v2673_v50, %v274_v30  ;;  %v426_v47 = vadd.f32 %v402_v29, %v374_v34  ;;  %v428_v54 = vadd.f32 %v402_v29, %v376_v36  ;;  %v427_v57 = vadd.f32 %v402_v29, %v375_v35 }
  0x9e   : > { %v284_v55 = vpop.permute.xlu0 %283  ;;  %v423_v56 = vadd.f32 %v402_v29, %v371_v38  ;;  %v429_v58 = vadd.f32 %v402_v29, %v377_v37  ;;  %v425_v3 = vadd.f32 %v402_v29, %v373_v40  ;;  %v422_v4 = vadd.f32 %v402_v29, %v370_v45 }
  0x9f   : > { %v2742_v59 = vmul.f32 %v2669_v44, %v284_v55  ;;  %v452_v60 = vpop.permute.xlu1 %451  ;;  %v424_v5 = vadd.f32 %v402_v29, %v372_v46  ;;  %v2745_v11 = vmul.f32 %v2671_v49, %v284_v55  ;;  %v2748_v16 = vmul.f32 %v2673_v50, %v284_v55 }
  0xa0   : > { %v2751_v10 = vmul.f32 %v2675_v51, %v284_v55  ;;  %v2754_v17 = vmul.f32 %v2661_v39, %v284_v55  ;;  %v546_v18 = vmul.f32 %v2677_v61, %v452_v60  ;;  %v548_v19 = vmul.f32 %v2679_v62, %v452_v60 }
  0xa1   : > { %v543_v20 = vmul.f32 %v2681_v63, %v452_v60  ;;  %v545_v25 = vmul.f32 %v2683_v0, %v452_v60  ;;  %v2761_v26 = vmul.f32 %v2663_v41, %v284_v55  ;;  %v542_v29 = vmul.f32 %v2685_v1, %v452_v60 }
  0xa2   : > { %v2763_v27 = vpop.permute.xlu0 %406  ;;  %v544_v30 = vmul.f32 %v2693_v9, %v452_v60  ;;  %v547_v34 = vmul.f32 %v2701_v15, %v452_v60  ;;  %v2769_v35 = vmul.f32 %v2665_v42, %v284_v55  ;;  %v2772_v36 = vmul.f32 %v2667_v43, %v284_v55 }
  0xa3   : > { %3283 = vst [vmem:[#allocation9_spill] sm:$0xff] %v2761_v26  ;;  %v575_v37 = vadd.f32 %v543_v20, %v423_v56  ;;  %v549_v38 = vmul.f32 %v2710_v22, %v452_v60  ;;  %v577_v45 = vadd.f32 %v545_v25, %v425_v3  ;;  %v574_v46 = vadd.f32 %v542_v29, %v422_v4 }
  0xa4   : > { %3284 = vst [vmem:[#allocation10_spill] sm:$0xff] %v2772_v36  ;;  %v279_v40 = vpop.permute.xlu1 %278  ;;  %v2775_v2 = vadd.f32 %v546_v18, %v426_v47  ;;  %v2777_v26 = vadd.f32 %v548_v19, %v428_v54  ;;  %v576_v60 = vadd.f32 %v544_v30, %v424_v5  ;;  %v2785_v20 = vadd.f32 %v547_v34, %v427_v57 }
  0xa5   : > { %v378_v28 = vmul.f32 %v2669_v44, %v279_v40  ;;  %v379_v24 = vmul.f32 %v2671_v49, %v279_v40  ;;  %v380_v33 = vmul.f32 %v2673_v50, %v279_v40  ;;  %v381_v23 = vmul.f32 %v2675_v51, %v279_v40 }
  0xa6   : > { %3285 = vst [vmem:[#allocation11_spill] sm:$0xff] %v2777_v26  ;;  %v382_v55 = vmul.f32 %v2661_v39, %v279_v40  ;;  %v384_v56 = vmul.f32 %v2665_v42, %v279_v40  ;;  %v2788_v47 = vmul.f32 %v2663_v41, %v279_v40  ;;  %v2791_v54 = vmul.f32 %v2667_v43, %v279_v40 }
  0xa7   : > { %v2793_v44 = vpop.permute.xlu0 %447  ;;  %v431_v49 = vadd.f32 %v2763_v27, %v379_v24  ;;  %v2796_v50 = vadd.f32 %v549_v38, %v429_v58  ;;  %v433_v39 = vadd.f32 %v2763_v27, %v381_v23  ;;  %v2803_v42 = vadd.f32 %v2763_v27, %v378_v28 }
  0xa8   : > { %v2799_v51 = vadd.f32 %v2763_v27, %v382_v55  ;;  %v2806_v41 = vadd.f32 %v2763_v27, %v380_v33  ;;  %v535_v43 = vmul.f32 %v2681_v63, %v2793_v44  ;;  %v537_v24 = vmul.f32 %v2683_v0, %v2793_v44 }
  0xa9   : > { %v2808_v57 = vpop.permute.xlu1 %599  ;;  %v534_v58 = vmul.f32 %v2685_v1, %v2793_v44  ;;  %v536_v23 = vmul.f32 %v2693_v9, %v2793_v44  ;;  %v2819_v28 = vadd.f32 %v2763_v27, %v384_v56  ;;  %v2823_v33 = vmul.f32 %v2677_v61, %v2793_v44 }
  0xaa   : > { %3286 = vst [vmem:[#allocation12_spill] sm:$0xff] %v2799_v51  ;;  %v687_v3 = vmul.f32 %v2691_v8, %v2808_v57  ;;  %v689_v4 = vmul.f32 %v2695_v12, %v2808_v57  ;;  %v567_v18 = vadd.f32 %v535_v43, %v2721_v31  ;;  %v569_v19 = vadd.f32 %v537_v24, %v2735_v48 }
  0xab   : > { %3287 = vst [vmem:[#allocation13_spill] sm:$0xff] %v2819_v28  ;;  %v2829_v5 = vpop.permute.xlu0 %455  ;;  %v566_v25 = vadd.f32 %v534_v58, %v2737_v52  ;;  %v686_v29 = vmul.f32 %v2697_v13, %v2808_v57  ;;  %v2838_v30 = vmul.f32 %v2679_v62, %v2793_v44  ;;  %v2842_v34 = vmul.f32 %v2687_v6, %v2808_v57 }
  0xac   : > { %v2846_v38 = vmul.f32 %v2689_v7, %v2808_v57  ;;  %v568_v31 = vadd.f32 %v536_v23, %v2739_v53  ;;  %v719_v52 = vadd.f32 %v687_v3, %v567_v18  ;;  %v721_v40 = vadd.f32 %v689_v4, %v569_v19 }
  0xad   : > { %v2849_v48 = vpop.permute.xlu1 %603  ;;  %v718_v55 = vadd.f32 %v686_v29, %v566_v25  ;;  %v688_v56 = vmul.f32 %v2699_v14, %v2808_v57  ;;  %v2855_v43 = vmul.f32 %v2677_v61, %v2829_v5  ;;  %v551_v53 = vmul.f32 %v2681_v63, %v2829_v5 }
  0xae   : > { %v695_v24 = vmul.f32 %v2691_v8, %v2849_v48  ;;  %v697_v58 = vmul.f32 %v2695_v12, %v2849_v48  ;;  %v2865_v23 = vmul.f32 %v2679_v62, %v2829_v5  ;;  %2190 = vtanh.f32 %v719_v52 }
  0xaf   : > { %3288 = vst [vmem:[#allocation14_spill] sm:$0xff] %v2855_v43  ;;  %v694_v3 = vmul.f32 %v2697_v13, %v2849_v48  ;;  %v696_v4 = vmul.f32 %v2699_v14, %v2849_v48  ;;  %v2873_v18 = vmul.f32 %v2687_v6, %v2849_v48  ;;  %2192 = vtanh.f32 %v721_v40 }
  0xb0   : > { %3289 = vst [vmem:[#allocation15_spill] sm:$0xff] %v2865_v23  ;;  %v2875_v19 = vpop.permute.xlu0 %611  ;;  %v727_v25 = vadd.f32 %v695_v24, %v575_v37  ;;  %v729_v29 = vadd.f32 %v697_v58, %v577_v45  ;;  %v2879_v28 = vmul.f32 %v2689_v7, %v2849_v48  ;;  %2194 = vtanh.f32 %v718_v55 }
  0xb1   : > { %v726_v52 = vadd.f32 %v694_v3, %v574_v46  ;;  %v720_v23 = vadd.f32 %v688_v56, %v568_v31  ;;  %v728_v51 = vadd.f32 %v696_v4, %v576_v60  ;;  %v583_v26 = vadd.f32 %v551_v53, %v431_v49 }
  0xb2   : > { %v2881_v43 = vpop.permute.xlu1 %411  ;;  %2196 = vtanh.f32 %v727_v25  ;;  %v553_v36 = vmul.f32 %v2683_v0, %v2829_v5  ;;  %v2887_v37 = vmul.f32 %v2687_v6, %v2875_v19  ;;  %v2891_v45 = vmul.f32 %v2689_v7, %v2875_v19 }
  0xb3   : > { %2198 = vtanh.f32 %v729_v29  ;;  %v711_v46 = vmul.f32 %v2691_v8, %v2875_v19  ;;  %v2897_v31 = vadd.f32 %v2881_v43, %v2754_v17  ;;  %v2901_v60 = vadd.f32 %v2881_v43, %v2769_v35 }
  0xb4   : > { %3290 = vst [vmem:[#allocation16_spill] sm:$0xff] %v2887_v37  ;;  %3291 = vst [vmem:[#allocation17_spill] sm:$0xff] %v2891_v45  ;;  %2200 = vtanh.f32 %v726_v52  ;;  %v439_v49 = vadd.f32 %v2881_v43, %v2745_v11  ;;  %v441_v40 = vadd.f32 %v2881_v43, %v2751_v10  ;;  %v585_v55 = vadd.f32 %v553_v36, %v433_v39 }
  0xb5   : > { %3292 = vst [vmem:[#allocation18_spill] sm:$0xff] %v2901_v60  ;;  %2202 = vtanh.f32 %v720_v23  ;;  %v550_v56 = vmul.f32 %v2685_v1, %v2829_v5  ;;  %v713_v17 = vmul.f32 %v2695_v12, %v2875_v19  ;;  %v438_v35 = vadd.f32 %v2881_v43, %v2742_v59 }
  0xb6   : > { %2204 = vtanh.f32 %v728_v51  ;;  %v710_v24 = vmul.f32 %v2697_v13, %v2875_v19  ;;  %v440_v11 = vadd.f32 %v2881_v43, %v2748_v16  ;;  %v552_v10 = vmul.f32 %v2693_v9, %v2829_v5 }
  0xb7   : > { %v2915_v58 = vpop.permute.xlu1 %459  ;;  %v539_v36 = vmul.f32 %v2701_v15, %v2793_v44  ;;  %v699_v51 = vmul.f32 %v2708_v21, %v2849_v48  ;;  %v582_v53 = vadd.f32 %v550_v56, %v2803_v42  ;;  %v712_v16 = vmul.f32 %v2699_v14, %v2875_v19 }
  0xb8   : > { %v559_v59 = vmul.f32 %v2681_v63, %v2915_v58  ;;  %v561_v39 = vmul.f32 %v2683_v0, %v2915_v58  ;;  %v2191_v23 = vpop.eup %2190  ;;  %v2934_v3 = vmul.f32 %v2677_v61, %v2915_v58  ;;  %v558_v4 = vmul.f32 %v2685_v1, %v2915_v58 }
  0xb9   : > { %v560_v25 = vmul.f32 %v2693_v9, %v2915_v58  ;;  %v691_v63 = vmul.f32 %v2708_v21, %v2808_v57  ;;  %v2193_v0 = vpop.eup %2192  ;;  %v731_v52 = vadd.f32 %v699_v51, %v2785_v20  ;;  %v541_v56 = vmul.f32 %v2710_v22, %v2793_v44  ;;  %v3294_v20 = vld [vmem:[#allocation5_spill] sm:$0xff] }
  0xba   : > { %3293 = vst [vmem:[#allocation19_spill] sm:$0xff] %v2934_v3  ;;  %v591_v29 = vadd.f32 %v559_v59, %v439_v49  ;;  %v593_v42 = vadd.f32 %v561_v39, %v441_v40  ;;  %v2195_v45 = vpop.eup %2194  ;;  %v2947_v61 = vmul.f32 %v2679_v62, %v2915_v58  ;;  %v590_v1 = vadd.f32 %v558_v4, %v438_v35  ;;  %v3295_v35 = vld [vmem:[#allocation8_spill] sm:$0xff] }
  0xbb   : > { %v584_v37 = vadd.f32 %v552_v10, %v2806_v41  ;;  %v571_v9 = vadd.f32 %v539_v36, %v2723_v32  ;;  %v592_v59 = vadd.f32 %v560_v25, %v440_v11  ;;  %v693_v51 = vmul.f32 %v3294_v20, %v2808_v57 }
  0xbc   : > { %v2197_v60 = vpop.eup %2196  ;;  %v2951_v3 = vpop.permute.xlu1 %607  ;;  %v743_v49 = vadd.f32 %v711_v46, %v591_v29  ;;  %v745_v40 = vadd.f32 %v713_v17, %v593_v42  ;;  %2206 = vtanh.f32 %v731_v52  ;;  %v573_v4 = vadd.f32 %v541_v56, %v3295_v35  ;;  %v3296_v42 = vld [vmem:[#allocation6_spill] sm:$0xff] }
  0xbd   : > { %v2199_v44 = vpop.eup %2198  ;;  %v783_v39 = vpack.c.bf16 %v2197_v60, %v2191_v23  ;;  %v703_v62 = vmul.f32 %v2691_v8, %v2951_v3  ;;  %v705_v32 = vmul.f32 %v2695_v12, %v2951_v3  ;;  %v702_v46 = vmul.f32 %v2697_v13, %v2951_v3 }
  0xbe   : > { %v2201_v41 = vpop.eup %2200  ;;  %v785_v10 = vpack.c.bf16 %v2199_v44, %v2193_v0  ;;  %2208 = vtanh.f32 %v743_v49  ;;  %v723_v60 = vadd.f32 %v691_v63, %v571_v9  ;;  %v742_v25 = vadd.f32 %v710_v24, %v590_v1  ;;  %v3297_v24 = vld [vmem:[#allocation7_spill] sm:$0xff]  ;;  %v3299_v1 = vld [vmem:[#allocation10_spill] sm:$0xff] }
  0xbf   : > { %v2203_v17 = vpop.eup %2202  ;;  %844 = vmatprep.subr.bf16.mxu0 %v783_v39  ;;  %v782_v57 = vpack.c.bf16 %v2201_v41, %v2195_v45  ;;  %v735_v11 = vadd.f32 %v703_v62, %v583_v26  ;;  %2210 = vtanh.f32 %v745_v40  ;;  %v737_v8 = vadd.f32 %v705_v32, %v585_v55  ;;  %v3303_v32 = vld [vmem:[#allocation14_spill] sm:$0xff] }
  0xc0   : > { %v2205_v36 = vpop.eup %2204  ;;  %897 = vmatprep.subr.bf16.mxu1 %v785_v10  ;;  %v734_v23 = vadd.f32 %v702_v46, %v582_v53  ;;  %v704_v0 = vmul.f32 %v2699_v14, %v2951_v3  ;;  %v744_v12 = vadd.f32 %v712_v16, %v592_v59  ;;  %v701_v13 = vmul.f32 %v3294_v20, %v2849_v48  ;;  %v3302_v10 = vld [vmem:[#allocation12_spill] sm:$0xff] }
  0xc1   : > { %845 = vmatpush1.bf16.msra.mxu0 %v782_v57  ;;  %v784_v29 = vpack.c.bf16 %v2205_v36, %v2203_v17  ;;  %2212 = vtanh.f32 %v735_v11  ;;  %v725_v26 = vadd.f32 %v693_v51, %v573_v4  ;;  %v570_v63 = vadd.f32 %v2823_v33, %v3296_v42  ;;  %v3301_v35 = vld [vmem:[#allocation19_spill] sm:$0xff]  ;;  %v3304_v57 = vld [vmem:[#allocation18_spill] sm:$0xff] }
  0xc2   : > { %2214 = vtanh.f32 %v737_v8  ;;  %v736_v45 = vadd.f32 %v704_v0, %v584_v37  ;;  %v733_v55 = vadd.f32 %v701_v13, %v2796_v50  ;;  %v730_v14 = vadd.f32 %v2873_v18, %v2775_v2  ;;  %v3298_v37 = vld [vmem:[#allocation9_spill] sm:$0xff] }
  0xc3   : > { %898 = vmatpush1.bf16.msra.mxu1 %v784_v29  ;;  %2216 = vtanh.f32 %v734_v23  ;;  %v572_v53 = vadd.f32 %v2838_v30, %v3297_v24  ;;  %v722_v16 = vadd.f32 %v2842_v34, %v570_v63  ;;  %v435_v48 = vadd.f32 %v2763_v27, %v2788_v47 }
  0xc4   : > { %2218 = vtanh.f32 %v742_v25  ;;  %v443_v52 = vadd.f32 %v2881_v43, %v3298_v37  ;;  %v555_v50 = vmul.f32 %v2701_v15, %v2829_v5  ;;  %v563_v2 = vmul.f32 %v2701_v15, %v2915_v58  ;;  %v3307_v25 = vld [vmem:[#allocation16_spill] sm:$0xff] }
  0xc5   : > { %2220 = vtanh.f32 %v736_v45  ;;  %v724_v33 = vadd.f32 %v2846_v38, %v572_v53  ;;  %v707_v30 = vmul.f32 %v2708_v21, %v2951_v3  ;;  %v715_v34 = vmul.f32 %v2708_v21, %v2875_v19 }
  0xc6   : > { %2222 = vtanh.f32 %v744_v12  ;;  %v437_v47 = vadd.f32 %v2763_v27, %v2791_v54  ;;  %v2207_v18 = vpop.eup %2206  ;;  %v587_v56 = vadd.f32 %v555_v50, %v435_v48  ;;  %v595_v38 = vadd.f32 %v563_v2, %v443_v52  ;;  %v3300_v54 = vld [vmem:[#allocation11_spill] sm:$0xff]  ;;  %v2186_v12 = vld [vmem:[%s3269_s2] sm:$0xff]  }
  0xc7   : > { %2224 = vtanh.f32 %v723_v60  ;;  %v445_v9 = vadd.f32 %v2881_v43, %v3299_v1  ;;  %v557_v15 = vmul.f32 %v2710_v22, %v2829_v5  ;;  %v565_v40 = vmul.f32 %v2710_v22, %v2915_v58  ;;  %v3305_v60 = vld [vmem:[#allocation13_spill] sm:$0xff] }
  0xc8   : > { %v2209_v49 = vpop.eup %2208  ;;  %2226 = vtanh.f32 %v725_v26  ;;  %v709_v21 = vmul.f32 %v3294_v20, %v2951_v3  ;;  %v706_v27 = vmul.f32 %v2687_v6, %v2951_v3  ;;  %v732_v51 = vadd.f32 %v2879_v28, %v3300_v54  ;;  %v3308_v26 = vld [vmem:[#allocation17_spill] sm:$0xff] }
  0xc9   : > { %v2211_v59 = vpop.eup %2210  ;;  %2228 = vtanh.f32 %v733_v55  ;;  %v717_v43 = vmul.f32 %v3294_v20, %v2875_v19  ;;  %v739_v44 = vadd.f32 %v707_v30, %v587_v56  ;;  %v589_v5 = vadd.f32 %v557_v15, %v437_v47  ;;  %v2187_v30 = vld [vmem:[%s3269_s2 + $0x8] sm:$0xff]  }
  0xca   : > { %2230 = vtanh.f32 %v722_v16  ;;  %v597_v39 = vadd.f32 %v565_v40, %v445_v9  ;;  %v708_v22 = vmul.f32 %v2689_v7, %v2951_v3  ;;  %v747_v58 = vadd.f32 %v715_v34, %v595_v38 }
  0xcb   : > { %v2213_v62 = vpop.eup %2212  ;;  %2232 = vtanh.f32 %v730_v14  ;;  %v594_v6 = vadd.f32 %v3301_v35, %v2897_v31  ;;  %v741_v28 = vadd.f32 %v709_v21, %v589_v5  ;;  %v586_v19 = vadd.f32 %v3303_v32, %v3302_v10  ;;  %v3306_v31 = vld [vmem:[#allocation15_spill] sm:$0xff] }
  0xcc   : > { %v2215_v4 = vpop.eup %2214  ;;  %v791_v41 = vpack.c.bf16 %v2209_v49, %v2213_v62  ;;  %2234 = vtanh.f32 %v724_v33  ;;  %v749_v17 = vadd.f32 %v717_v43, %v597_v39  ;;  %v596_v11 = vadd.f32 %v2947_v61, %v3304_v57 }
  0xcd   : > { %v2217_v20 = vpop.eup %2216  ;;  %v793_v46 = vpack.c.bf16 %v2211_v59, %v2215_v4  ;;  %2236 = vtanh.f32 %v732_v51  ;;  %v738_v3 = vadd.f32 %v706_v27, %v586_v19  ;;  %v588_v36 = vadd.f32 %v3306_v31, %v3305_v60  ;;  %v3037_v59 = vpop.permute.xlu1 %809 }
  0xce   : > { %v2219_v7 = vpop.eup %2218  ;;  %846 = vmatprep.subr.bf16.mxu0 %v791_v41  ;;  %2238 = vtanh.f32 %v739_v44  ;;  %v746_v0 = vadd.f32 %v3307_v25, %v594_v6  ;;  %v748_v42 = vadd.f32 %v3308_v26, %v596_v11  ;;  %v3309_v48 = vmov 0   ;;  %v3049_v19 = vpop.permute.xlu0 %819 }
  0xcf   : > { %v2221_v8 = vpop.eup %2220  ;;  %899 = vmatprep.subr.bf16.mxu1 %v793_v46  ;;  %v790_v23 = vpack.c.bf16 %v2219_v7, %v2217_v20  ;;  %2240 = vtanh.f32 %v747_v58  ;;  %v740_v61 = vadd.f32 %v708_v22, %v588_v36 }
  0xd0   : > { %v2223_v29 = vpop.eup %2222  ;;  %2242 = vtanh.f32 %v741_v28 }
  0xd1   : > { %v2225_v13 = vpop.eup %2224  ;;  %847 = vmatpush1.bf16.msra.mxu0 %v790_v23  ;;  %v792_v45 = vpack.c.bf16 %v2223_v29, %v2221_v8  ;;  %2244 = vtanh.f32 %v749_v17  ;;  %v3039_v54 = vpop.permute.xlu1 %814 }
  0xd2   : > { %v2227_v63 = vpop.eup %2226  ;;  %v787_v55 = vpack.c.bf16 %v2207_v18, %v2225_v13  ;;  %2246 = vtanh.f32 %v738_v3 }
  0xd3   : > { %v2229_v14 = vpop.eup %2228  ;;  %900 = vmatpush1.bf16.msra.mxu1 %v792_v45  ;;  %2248 = vtanh.f32 %v746_v0 }
  0xd4   : > { %v2231_v24 = vpop.eup %2230  ;;  %950 = vmatprep.subr.bf16.mxu0 %v787_v55  ;;  %v789_v53 = vpack.c.bf16 %v2229_v14, %v2227_v63  ;;  %2055 = vmatmul.mubr.msk.bf16.vlgmr.msra.gmra.mrb[0].mxu0 %vm837_vm0, %v2186_v12  ;;  %2250 = vtanh.f32 %v740_v61 }
  0xd5   : > { %v2233_v16 = vpop.eup %2232  ;;  %2252 = vtanh.f32 %v748_v42  ;;  %886 = vmatprep.mubr.bf16.mxu0 %v3309_v48  ;;  %v3051_v46 = vpop.permute.xlu1 %824 }
  0xd6   : > { %v2235_v37 = vpop.eup %2234  ;;  %1003 = vmatprep.subr.bf16.mxu1 %v789_v53  ;;  %2057 = vmatmul.mubr.msk.bf16.vlgmr.msra.gmra.mrb[0].mxu1 %vm837_vm0, %v2186_v12  ;;  %v786_v52 = vpack.c.bf16 %v2233_v16, %v2231_v24 }
  0xd7   : > { %v2237_v33 = vpop.eup %2236  ;;  %939 = vmatprep.mubr.bf16.mxu1 %v3309_v48 }
  0xd8   : > { %v2239_v50 = vpop.eup %2238  ;;  %951 = vmatpush1.bf16.msra.mxu0 %v786_v52  ;;  %v788_v2 = vpack.c.bf16 %v2237_v33, %v2235_v37 }
  0xd9   : > { %v2241_v34 = vpop.eup %2240 }
  0xda   : > { %v2243_v47 = vpop.eup %2242  ;;  %1004 = vmatpush1.bf16.msra.mxu1 %v788_v2  ;;  %v795_v18 = vpack.c.bf16 %v2241_v34, %v2239_v50 }
  0xdb   : > { %v2245_v56 = vpop.eup %2244 }
  0xdc   : > { %v2247_v38 = vpop.eup %2246  ;;  %952 = vmatprep.subr.bf16.mxu0 %v795_v18  ;;  %v797_v1 = vpack.c.bf16 %v2245_v56, %v2243_v47  ;;  %2056 = vmatmul.mubr.msk.bf16.gmra.mrb[4].mxu0 %vm837_vm0, %v2187_v30 }
  0xdd   : > { %v2249_v9 = vpop.eup %2248  ;;  %982 = vmatprep.mubr.bf16.mxu0 %v3309_v48 }
  0xde   : > { %v2251_v49 = vpop.eup %2250  ;;  %1005 = vmatprep.subr.bf16.mxu1 %v797_v1  ;;  %v794_v15 = vpack.c.bf16 %v2249_v9, %v2247_v38  ;;  %2058 = vmatmul.mubr.msk.bf16.gmra.mrb[4].mxu1 %vm837_vm0, %v2187_v30 }
  0xdf   : > { %v2253_v40 = vpop.eup %2252  ;;  %1035 = vmatprep.mubr.bf16.mxu1 %v3309_v48 }
  0xe0   : > { %953 = vmatpush1.bf16.msra.mxu0 %v794_v15  ;;  %v796_v21 = vpack.c.bf16 %v2253_v40, %v2251_v49 }
  0xe2   : > { %1006 = vmatpush1.bf16.msra.mxu1 %v796_v21 }
  0xe4   : > { %2059 = vmatmul.mubr.msk.bf16.vlgmr.msra.gmra.mrb[8].mxu0 %vm837_vm0, %v2186_v12 }
  0xe5   : > { %992 = vmatprep.mubr.bf16.mxu0 %v3309_v48 }
  0xe6   : > { %2061 = vmatmul.mubr.msk.bf16.vlgmr.msra.gmra.mrb[8].mxu1 %vm837_vm0, %v2186_v12 }
  0xe7   : > { %1045 = vmatprep.mubr.bf16.mxu1 %v3309_v48 }
  0xec   : > { %2060 = vmatmul.mubr.msk.bf16.gmra.mrb[12].mxu0 %vm837_vm0, %v2187_v30 }
  0xed   : > { %1182 = vmatprep.mubr.bf16.mxu0 %v3309_v48 }
  0xee   : > { %2062 = vmatmul.mubr.msk.bf16.gmra.mrb[12].mxu1 %vm837_vm0, %v2187_v30 }
  0xef   : > { %1235 = vmatprep.mubr.bf16.mxu1 %v3309_v48 }
 0x1a7   : > { %v878_v27 = vpop.f32.mrb[0].mxu0 }
 0x1a8   : > { %v879_v51 = vadd.f32 %v878_v27, %v3037_v59  ;;  %v880_v43 = vpop.f32.mrb[1].mxu0 }
 0x1a9   : > { %v931_v44 = vpop.f32.mrb[0].mxu1  ;;  %v881_v5 = vadd.f32 %v880_v43, %v3037_v59  ;;  %v882_v39 = vpop.f32.mrb[2].mxu0 }
 0x1aa   : > { %2254 = vtanh.f32 %v879_v51  ;;  %v932_v62 = vadd.f32 %v931_v44, %v3037_v59  ;;  %v933_v22 = vpop.f32.mrb[1].mxu1  ;;  %v883_v58 = vadd.f32 %v882_v39, %v3039_v54  ;;  %v884_v35 = vpop.f32.mrb[3].mxu0 }
 0x1ab   : > { %2256 = vtanh.f32 %v881_v5  ;;  %v934_v6 = vadd.f32 %v933_v22, %v3037_v59  ;;  %v935_v4 = vpop.f32.mrb[2].mxu1  ;;  %v885_v28 = vadd.f32 %v884_v35, %v3039_v54 }
 0x1ac   : > { %2258 = vtanh.f32 %v932_v62  ;;  %v936_v41 = vadd.f32 %v935_v4, %v3039_v54  ;;  %v937_v10 = vpop.f32.mrb[3].mxu1 }
 0x1ad   : > { %2260 = vtanh.f32 %v934_v6  ;;  %v938_v32 = vadd.f32 %v937_v10, %v3039_v54 }
 0x1ae   : > { %2262 = vtanh.f32 %v883_v58 }
 0x1af   : > { %2264 = vtanh.f32 %v936_v41  ;;  %v888_v20 = vpop.f32.mrb[4].mxu0 }
 0x1b0   : > { %2266 = vtanh.f32 %v885_v28  ;;  %v889_v17 = vadd.f32 %v888_v20, %v3049_v19  ;;  %v890_v57 = vpop.f32.mrb[5].mxu0 }
 0x1b1   : > { %2268 = vtanh.f32 %v938_v32  ;;  %v941_v11 = vpop.f32.mrb[4].mxu1  ;;  %v891_v7 = vadd.f32 %v890_v57, %v3049_v19  ;;  %v892_v3 = vpop.f32.mrb[6].mxu0 }
 0x1b2   : > { %2270 = vtanh.f32 %v889_v17  ;;  %v942_v60 = vadd.f32 %v941_v11, %v3049_v19  ;;  %v943_v31 = vpop.f32.mrb[5].mxu1  ;;  %v893_v36 = vadd.f32 %v892_v3, %v3051_v46  ;;  %v894_v8 = vpop.f32.mrb[7].mxu0 }
 0x1b3   : > { %2272 = vtanh.f32 %v891_v7  ;;  %v944_v23 = vadd.f32 %v943_v31, %v3049_v19  ;;  %v945_v25 = vpop.f32.mrb[6].mxu1  ;;  %v895_v12 = vadd.f32 %v894_v8, %v3051_v46 }
 0x1b4   : > { %v2255_v0 = vpop.eup %2254  ;;  %2274 = vtanh.f32 %v942_v60  ;;  %v946_v29 = vadd.f32 %v945_v25, %v3051_v46  ;;  %v947_v61 = vpop.f32.mrb[7].mxu1 }
 0x1b5   : > { %v2257_v13 = vpop.eup %2256  ;;  %2276 = vtanh.f32 %v944_v23  ;;  %v948_v45 = vadd.f32 %v947_v61, %v3051_v46 }
 0x1b6   : > { %v2259_v26 = vpop.eup %2258  ;;  %2278 = vtanh.f32 %v893_v36 }
 0x1b7   : > { %v2261_v42 = vpop.eup %2260  ;;  %2280 = vtanh.f32 %v946_v29  ;;  %v984_v63 = vpop.f32.mrb[8].mxu0  ;;  %v3080_v29 = vld [vmem:[%s3269_s2 + $0x10] sm:$0xff]  }
 0x1b8   : > { %v2263_v55 = vpop.eup %2262  ;;  %2282 = vtanh.f32 %v895_v12  ;;  %v985_v14 = vadd.f32 %v984_v63, %v3037_v59  ;;  %v986_v24 = vpop.f32.mrb[9].mxu0 }
 0x1b9   : > { %v2265_v53 = vpop.eup %2264  ;;  %2284 = vtanh.f32 %v948_v45  ;;  %v1037_v16 = vpop.f32.mrb[8].mxu1  ;;  %v987_v37 = vadd.f32 %v986_v24, %v3037_v59  ;;  %v1088_v33 = vpack.c.bf16 %v2263_v55, %v2255_v0 }
 0x1ba   : > { %v988_v52 = vpop.f32.mrb[10].mxu0  ;;  %v2267_v50 = vpop.eup %2266  ;;  %2286 = vtanh.f32 %v985_v14  ;;  %v1038_v2 = vadd.f32 %v1037_v16, %v3037_v59  ;;  %v1090_v18 = vpack.c.bf16 %v2265_v53, %v2259_v26  ;;  %v3091_v53 = vld [vmem:[%s3269_s2 + $0x18] sm:$0xff]  }
 0x1bb   : > { %v1039_v30 = vpop.f32.mrb[9].mxu1  ;;  %v989_v34 = vadd.f32 %v988_v52, %v3039_v54  ;;  %v990_v47 = vpop.f32.mrb[11].mxu0  ;;  %2288 = vtanh.f32 %v987_v37  ;;  %v1089_v9 = vpack.c.bf16 %v2267_v50, %v2257_v13 }
 0x1bc   : > { %v2269_v56 = vpop.eup %2268  ;;  %v1040_v38 = vadd.f32 %v1039_v30, %v3037_v59  ;;  %v1041_v1 = vpop.f32.mrb[10].mxu1  ;;  %2290 = vtanh.f32 %v1038_v2  ;;  %v991_v40 = vadd.f32 %v990_v47, %v3039_v54 }
 0x1bd   : > { %v2271_v49 = vpop.eup %2270  ;;  %v1042_v15 = vadd.f32 %v1041_v1, %v3039_v54  ;;  %v1043_v21 = vpop.f32.mrb[11].mxu1  ;;  %v1091_v27 = vpack.c.bf16 %v2269_v56, %v2261_v42  ;;  %1150 = vmatprep.subr.bf16.mxu0 %v1089_v9 }
 0x1be   : > { %v2273_v51 = vpop.eup %2272  ;;  %2292 = vtanh.f32 %v1040_v38  ;;  %v1044_v43 = vadd.f32 %v1043_v21, %v3039_v54  ;;  %1151 = vmatpush1.bf16.msra.mxu0 %v1088_v33  ;;  %v3111_v56 = vpop.permute.xlu1 %1116 }
 0x1bf   : > { %v2275_v44 = vpop.eup %2274  ;;  %2294 = vtanh.f32 %v989_v34  ;;  %1203 = vmatprep.subr.bf16.mxu1 %v1091_v27  ;;  %v994_v5 = vpop.f32.mrb[12].mxu0 }
 0x1c0   : > { %v2277_v59 = vpop.eup %2276  ;;  %2296 = vtanh.f32 %v1042_v15  ;;  %1204 = vmatpush1.bf16.msra.mxu1 %v1090_v18  ;;  %v995_v62 = vadd.f32 %v994_v5, %v3049_v19  ;;  %v996_v22 = vpop.f32.mrb[13].mxu0 }
 0x1c1   : > { %v2279_v39 = vpop.eup %2278  ;;  %2298 = vtanh.f32 %v991_v40  ;;  %v1047_v35 = vpop.f32.mrb[12].mxu1  ;;  %v997_v6 = vadd.f32 %v996_v22, %v3049_v19 }
 0x1c2   : > { %v2281_v58 = vpop.eup %2280  ;;  %2300 = vtanh.f32 %v1044_v43  ;;  %v998_v54 = vpop.f32.mrb[14].mxu0  ;;  %v1096_v4 = vpack.c.bf16 %v2279_v39, %v2271_v49  ;;  %v1048_v28 = vadd.f32 %v1047_v35, %v3049_v19 }
 0x1c3   : > { %v2283_v41 = vpop.eup %2282  ;;  %2302 = vtanh.f32 %v995_v62  ;;  %v1049_v10 = vpop.f32.mrb[13].mxu1  ;;  %v999_v32 = vadd.f32 %v998_v54, %v3051_v46  ;;  %v1098_v17 = vpack.c.bf16 %v2281_v58, %v2275_v44 }
 0x1c4   : > { %v1000_v20 = vpop.f32.mrb[15].mxu0  ;;  %v2285_v57 = vpop.eup %2284  ;;  %2304 = vtanh.f32 %v997_v6  ;;  %v1050_v11 = vadd.f32 %v1049_v10, %v3049_v19  ;;  %v1097_v3 = vpack.c.bf16 %v2283_v41, %v2273_v51 }
 0x1c5   : > { %v1051_v7 = vpop.f32.mrb[14].mxu1  ;;  %v2287_v60 = vpop.eup %2286  ;;  %2306 = vtanh.f32 %v1048_v28  ;;  %v1001_v36 = vadd.f32 %v1000_v20, %v3051_v46  ;;  %v1099_v23 = vpack.c.bf16 %v2285_v57, %v2277_v59 }
 0x1c6   : > { %v1052_v31 = vadd.f32 %v1051_v7, %v3051_v46  ;;  %v1053_v8 = vpop.f32.mrb[15].mxu1  ;;  %v2289_v25 = vpop.eup %2288  ;;  %2308 = vtanh.f32 %v1050_v11  ;;  %1152 = vmatprep.subr.bf16.mxu0 %v1097_v3 }
 0x1c7   : > { %v1054_v0 = vadd.f32 %v1053_v8, %v3051_v46  ;;  %v2291_v19 = vpop.eup %2290  ;;  %2310 = vtanh.f32 %v999_v32  ;;  %1205 = vmatprep.subr.bf16.mxu1 %v1099_v23  ;;  %1153 = vmatpush1.bf16.msra.mxu0 %v1096_v4  ;;  %v3113_v38 = vpop.permute.xlu0 %1121 }
 0x1c8   : > { %v2293_v12 = vpop.eup %2292  ;;  %2312 = vtanh.f32 %v1052_v31  ;;  %1206 = vmatpush1.bf16.msra.mxu1 %v1098_v17  ;;  %v3123_v35 = vpop.permute.xlu1 %1126 }
 0x1c9   : > { %v2295_v61 = vpop.eup %2294  ;;  %2314 = vtanh.f32 %v1001_v36 }
 0x1ca   : > { %v2297_v13 = vpop.eup %2296  ;;  %2316 = vtanh.f32 %v1054_v0  ;;  %2073 = vmatmul.mubr.msk.bf16.vlgmr.msra.gmra.mrb[16].mxu0 %vm837_vm0, %v3080_v29  ;;  %v1092_v46 = vpack.c.bf16 %v2295_v61, %v2287_v60 }
 0x1cb   : > { %v2299_v45 = vpop.eup %2298  ;;  %2075 = vmatmul.mubr.msk.bf16.vlgmr.msra.gmra.mrb[16].mxu1 %vm837_vm0, %v3080_v29  ;;  %v1094_v26 = vpack.c.bf16 %v2297_v13, %v2291_v19  ;;  %1192 = vmatprep.mubr.bf16.mxu0 %v3309_v48  ;;  %v3125_v6 = vpop.permute.xlu0 %1131 }
 0x1cc   : > { %v2301_v42 = vpop.eup %2300  ;;  %v1093_v63 = vpack.c.bf16 %v2299_v45, %v2289_v25  ;;  %1245 = vmatprep.mubr.bf16.mxu1 %v3309_v48 }
 0x1cd   : > { %v2303_v55 = vpop.eup %2302  ;;  %v1095_v14 = vpack.c.bf16 %v2301_v42, %v2293_v12 }
 0x1ce   : > { %v2305_v24 = vpop.eup %2304  ;;  %1256 = vmatprep.subr.bf16.mxu0 %v1093_v63 }
 0x1cf   : > { %v2307_v16 = vpop.eup %2306  ;;  %1309 = vmatprep.subr.bf16.mxu1 %v1095_v14  ;;  %1257 = vmatpush1.bf16.msra.mxu0 %v1092_v46 }
 0x1d0   : > { %v2309_v37 = vpop.eup %2308  ;;  %1310 = vmatpush1.bf16.msra.mxu1 %v1094_v26 }
 0x1d1   : > { %v2311_v52 = vpop.eup %2310 }
 0x1d2   : > { %v2313_v33 = vpop.eup %2312  ;;  %2074 = vmatmul.mubr.msk.bf16.gmra.mrb[20].mxu0 %vm837_vm0, %v3091_v53  ;;  %v1100_v50 = vpack.c.bf16 %v2311_v52, %v2303_v55 }
 0x1d3   : > { %v2315_v2 = vpop.eup %2314  ;;  %2076 = vmatmul.mubr.msk.bf16.gmra.mrb[20].mxu1 %vm837_vm0, %v3091_v53  ;;  %v1102_v30 = vpack.c.bf16 %v2313_v33, %v2307_v16  ;;  %1288 = vmatprep.mubr.bf16.mxu0 %v3309_v48 }
 0x1d4   : > { %v2317_v34 = vpop.eup %2316  ;;  %v1101_v47 = vpack.c.bf16 %v2315_v2, %v2305_v24  ;;  %1341 = vmatprep.mubr.bf16.mxu1 %v3309_v48 }
 0x1d5   : > { %v1103_v18 = vpack.c.bf16 %v2317_v34, %v2309_v37 }
 0x1d6   : > { %1258 = vmatprep.subr.bf16.mxu0 %v1101_v47 }
 0x1d7   : > { %1311 = vmatprep.subr.bf16.mxu1 %v1103_v18  ;;  %1259 = vmatpush1.bf16.msra.mxu0 %v1100_v50 }
 0x1d8   : > { %1312 = vmatpush1.bf16.msra.mxu1 %v1102_v30 }
 0x1da   : > { %2077 = vmatmul.mubr.msk.bf16.vlgmr.msra.gmra.mrb[24].mxu0 %vm837_vm0, %v3080_v29 }
 0x1db   : > { %2079 = vmatmul.mubr.msk.bf16.vlgmr.msra.gmra.mrb[24].mxu1 %vm837_vm0, %v3080_v29  ;;  %1298 = vmatprep.mubr.bf16.mxu0 %v3309_v48 }
 0x1dc   : > { %1351 = vmatprep.mubr.bf16.mxu1 %v3309_v48 }
 0x1e2   : > { %2078 = vmatmul.mubr.msk.bf16.gmra.mrb[28].mxu0 %vm837_vm0, %v3091_v53 }
 0x1e3   : > { %2080 = vmatmul.mubr.msk.bf16.gmra.mrb[28].mxu1 %vm837_vm0, %v3091_v53  ;;  %1442 = vmatprep.mubr.bf16.mxu0 %v3309_v48 }
 0x1e4   : > { %1495 = vmatprep.mubr.bf16.mxu1 %v3309_v48 }
 0x29d   : > { %v1184_v1 = vpop.f32.mrb[16].mxu0 }
 0x29e   : > { %v1185_v9 = vadd.f32 %v1184_v1, %v3111_v56  ;;  %v1237_v49 = vpop.f32.mrb[16].mxu1  ;;  %v1186_v15 = vpop.f32.mrb[17].mxu0 }
 0x29f   : > { %v1238_v40 = vadd.f32 %v1237_v49, %v3111_v56  ;;  %v1187_v21 = vadd.f32 %v1186_v15, %v3111_v56  ;;  %v1239_v27 = vpop.f32.mrb[17].mxu1  ;;  %v1188_v51 = vpop.f32.mrb[18].mxu0 }
 0x2a0   : > { %2318 = vtanh.f32 %v1185_v9  ;;  %v1240_v43 = vadd.f32 %v1239_v27, %v3111_v56  ;;  %v1189_v44 = vadd.f32 %v1188_v51, %v3113_v38  ;;  %v1241_v59 = vpop.f32.mrb[18].mxu1  ;;  %v1190_v5 = vpop.f32.mrb[19].mxu0 }
 0x2a1   : > { %2320 = vtanh.f32 %v1238_v40  ;;  %v1242_v39 = vadd.f32 %v1241_v59, %v3113_v38  ;;  %v1243_v62 = vpop.f32.mrb[19].mxu1  ;;  %v1191_v22 = vadd.f32 %v1190_v5, %v3113_v38 }
 0x2a2   : > { %2322 = vtanh.f32 %v1187_v21  ;;  %v1244_v58 = vadd.f32 %v1243_v62, %v3113_v38 }
 0x2a3   : > { %2324 = vtanh.f32 %v1240_v43 }
 0x2a4   : > { %2326 = vtanh.f32 %v1189_v44 }
 0x2a5   : > { %2328 = vtanh.f32 %v1242_v39  ;;  %v1194_v54 = vpop.f32.mrb[20].mxu0 }
 0x2a6   : > { %2330 = vtanh.f32 %v1191_v22  ;;  %v1195_v4 = vadd.f32 %v1194_v54, %v3123_v35  ;;  %v1247_v41 = vpop.f32.mrb[20].mxu1  ;;  %v1196_v28 = vpop.f32.mrb[21].mxu0 }
 0x2a7   : > { %2332 = vtanh.f32 %v1244_v58  ;;  %v1248_v10 = vadd.f32 %v1247_v41, %v3123_v35  ;;  %v1197_v32 = vadd.f32 %v1196_v28, %v3123_v35  ;;  %v1249_v20 = vpop.f32.mrb[21].mxu1  ;;  %v1198_v17 = vpop.f32.mrb[22].mxu0 }
 0x2a8   : > { %2334 = vtanh.f32 %v1195_v4  ;;  %v1250_v57 = vadd.f32 %v1249_v20, %v3123_v35  ;;  %v1199_v11 = vadd.f32 %v1198_v17, %v3125_v6  ;;  %v1251_v7 = vpop.f32.mrb[22].mxu1  ;;  %v1200_v3 = vpop.f32.mrb[23].mxu0 }
 0x2a9   : > { %2336 = vtanh.f32 %v1248_v10  ;;  %v1252_v60 = vadd.f32 %v1251_v7, %v3125_v6  ;;  %v1253_v31 = vpop.f32.mrb[23].mxu1  ;;  %v1201_v8 = vadd.f32 %v1200_v3, %v3125_v6 }
 0x2aa   : > { %v2319_v36 = vpop.eup %2318  ;;  %2338 = vtanh.f32 %v1197_v32  ;;  %v1254_v25 = vadd.f32 %v1253_v31, %v3125_v6 }
 0x2ab   : > { %v2321_v23 = vpop.eup %2320  ;;  %2340 = vtanh.f32 %v1250_v57 }
 0x2ac   : > { %v2323_v0 = vpop.eup %2322  ;;  %2342 = vtanh.f32 %v1199_v11 }
 0x2ad   : > { %v2325_v19 = vpop.eup %2324  ;;  %2344 = vtanh.f32 %v1252_v60  ;;  %v1290_v12 = vpop.f32.mrb[24].mxu0 }
 0x2ae   : > { %v2327_v61 = vpop.eup %2326  ;;  %2346 = vtanh.f32 %v1201_v8  ;;  %v1291_v13 = vadd.f32 %v1290_v12, %v3111_v56  ;;  %v1343_v46 = vpop.f32.mrb[24].mxu1 }
 0x2af   : > { %v1292_v45 = vpop.f32.mrb[25].mxu0  ;;  %v2329_v26 = vpop.eup %2328  ;;  %2348 = vtanh.f32 %v1254_v25  ;;  %v1344_v42 = vadd.f32 %v1343_v46, %v3111_v56  ;;  %v1394_v24 = vpack.c.bf16 %v2327_v61, %v2319_v36 }
 0x2b0   : > { %v1293_v63 = vadd.f32 %v1292_v45, %v3111_v56  ;;  %v1345_v55 = vpop.f32.mrb[25].mxu1  ;;  %v1294_v14 = vpop.f32.mrb[26].mxu0  ;;  %2350 = vtanh.f32 %v1291_v13  ;;  %v1396_v2 = vpack.c.bf16 %v2329_v26, %v2321_v23 }
 0x2b1   : > { %v2331_v16 = vpop.eup %2330  ;;  %v1346_v37 = vadd.f32 %v1345_v55, %v3111_v56  ;;  %v1295_v52 = vadd.f32 %v1294_v14, %v3113_v38  ;;  %v1347_v33 = vpop.f32.mrb[26].mxu1  ;;  %2352 = vtanh.f32 %v1344_v42 }
 0x2b2   : > { %v1296_v50 = vpop.f32.mrb[27].mxu0  ;;  %v2333_v30 = vpop.eup %2332  ;;  %v1348_v34 = vadd.f32 %v1347_v33, %v3113_v38  ;;  %v1395_v18 = vpack.c.bf16 %v2331_v16, %v2323_v0  ;;  %2354 = vtanh.f32 %v1293_v63 }
 0x2b3   : > { %v1349_v47 = vpop.f32.mrb[27].mxu1  ;;  %v2335_v1 = vpop.eup %2334  ;;  %v1297_v9 = vadd.f32 %v1296_v50, %v3113_v38  ;;  %v1397_v49 = vpack.c.bf16 %v2333_v30, %v2325_v19  ;;  %2356 = vtanh.f32 %v1346_v37 }
 0x2b4   : > { %v2337_v15 = vpop.eup %2336  ;;  %v1350_v40 = vadd.f32 %v1349_v47, %v3113_v38  ;;  %1410 = vmatprep.subr.bf16.mxu0 %v1395_v18  ;;  %2358 = vtanh.f32 %v1295_v52  ;;  %v2513_v47 = vmov 0.0  }
 0x2b5   : > { %v2339_v21 = vpop.eup %2338  ;;  %1463 = vmatprep.subr.bf16.mxu1 %v1397_v49  ;;  %1411 = vmatpush1.bf16.msra.mxu0 %v1394_v24  ;;  %2360 = vtanh.f32 %v1348_v34  ;;  %v1300_v51 = vpop.f32.mrb[28].mxu0 }
 0x2b6   : > { %v2341_v27 = vpop.eup %2340  ;;  %1464 = vmatpush1.bf16.msra.mxu1 %v1396_v2  ;;  %2362 = vtanh.f32 %v1297_v9  ;;  %v1301_v44 = vadd.f32 %v1300_v51, %v3123_v35  ;;  %v1353_v59 = vpop.f32.mrb[28].mxu1 }
 0x2b7   : > { %v2343_v43 = vpop.eup %2342  ;;  %v1302_v5 = vpop.f32.mrb[29].mxu0  ;;  %2364 = vtanh.f32 %v1350_v40  ;;  %v1354_v62 = vadd.f32 %v1353_v59, %v3123_v35 }
 0x2b8   : > { %v2345_v39 = vpop.eup %2344  ;;  %v1303_v22 = vadd.f32 %v1302_v5, %v3123_v35  ;;  %v1355_v58 = vpop.f32.mrb[29].mxu1  ;;  %v1402_v4 = vpack.c.bf16 %v2343_v43, %v2335_v1  ;;  %2366 = vtanh.f32 %v1301_v44 }
 0x2b9   : > { %v1304_v54 = vpop.f32.mrb[30].mxu0  ;;  %v2347_v41 = vpop.eup %2346  ;;  %v1356_v28 = vadd.f32 %v1355_v58, %v3123_v35  ;;  %v1404_v17 = vpack.c.bf16 %v2345_v39, %v2337_v15  ;;  %2368 = vtanh.f32 %v1354_v62 }
 0x2ba   : > { %v1305_v10 = vadd.f32 %v1304_v54, %v3125_v6  ;;  %v1357_v32 = vpop.f32.mrb[30].mxu1  ;;  %v1306_v20 = vpop.f32.mrb[31].mxu0  ;;  %v1403_v3 = vpack.c.bf16 %v2347_v41, %v2339_v21  ;;  %2370 = vtanh.f32 %v1303_v22 }
 0x2bb   : > { %v2349_v57 = vpop.eup %2348  ;;  %v1358_v11 = vadd.f32 %v1357_v32, %v3125_v6  ;;  %v1359_v7 = vpop.f32.mrb[31].mxu1  ;;  %v1307_v31 = vadd.f32 %v1306_v20, %v3125_v6  ;;  %2372 = vtanh.f32 %v1356_v28 }
 0x2bc   : > { %v2351_v60 = vpop.eup %2350  ;;  %v1405_v36 = vpack.c.bf16 %v2349_v57, %v2341_v27  ;;  %v1360_v23 = vadd.f32 %v1359_v7, %v3125_v6  ;;  %1412 = vmatprep.subr.bf16.mxu0 %v1403_v3  ;;  %2374 = vtanh.f32 %v1305_v10 }
 0x2bd   : > { %v2353_v8 = vpop.eup %2352  ;;  %1413 = vmatpush1.bf16.msra.mxu0 %v1402_v4  ;;  %2376 = vtanh.f32 %v1358_v11 }
 0x2be   : > { %v2355_v25 = vpop.eup %2354  ;;  %1465 = vmatprep.subr.bf16.mxu1 %v1405_v36  ;;  %2378 = vtanh.f32 %v1307_v31 }
 0x2bf   : > { %v2357_v0 = vpop.eup %2356  ;;  %1466 = vmatpush1.bf16.msra.mxu1 %v1404_v17  ;;  %2380 = vtanh.f32 %v1360_v23 }
 0x2c0   : > { %v2359_v19 = vpop.eup %2358  ;;  %2081 = vmatmul.mubr.msk.bf16.vlgmr.msra.gmra.mrb[32].mxu0 %vm837_vm0, %v3080_v29 }
 0x2c1   : > { %v2361_v12 = vpop.eup %2360  ;;  %v1398_v61 = vpack.c.bf16 %v2359_v19, %v2351_v60  ;;  %1452 = vmatprep.mubr.bf16.mxu0 %v3309_v48 }
 0x2c2   : > { %v2363_v13 = vpop.eup %2362  ;;  %2083 = vmatmul.mubr.msk.bf16.vlgmr.msra.gmra.mrb[32].mxu1 %vm837_vm0, %v3080_v29  ;;  %v1400_v46 = vpack.c.bf16 %v2361_v12, %v2353_v8 }
 0x2c3   : > { %v2365_v45 = vpop.eup %2364  ;;  %v1399_v26 = vpack.c.bf16 %v2363_v13, %v2355_v25  ;;  %1505 = vmatprep.mubr.bf16.mxu1 %v3309_v48 }
 0x2c4   : > { %v2367_v42 = vpop.eup %2366  ;;  %v1401_v63 = vpack.c.bf16 %v2365_v45, %v2357_v0 }
 0x2c5   : > { %v2369_v55 = vpop.eup %2368  ;;  %1516 = vmatprep.subr.bf16.mxu0 %v1399_v26 }
 0x2c6   : > { %v2371_v14 = vpop.eup %2370  ;;  %1569 = vmatprep.subr.bf16.mxu1 %v1401_v63  ;;  %1517 = vmatpush1.bf16.msra.mxu0 %v1398_v61 }
 0x2c7   : > { %v2373_v24 = vpop.eup %2372  ;;  %1570 = vmatpush1.bf16.msra.mxu1 %v1400_v46 }
 0x2c8   : > { %v2375_v16 = vpop.eup %2374  ;;  %2082 = vmatmul.mubr.msk.bf16.gmra.mrb[36].mxu0 %vm837_vm0, %v3091_v53 }
 0x2c9   : > { %v2377_v37 = vpop.eup %2376  ;;  %v1406_v52 = vpack.c.bf16 %v2375_v16, %v2367_v42  ;;  %1548 = vmatprep.mubr.bf16.mxu0 %v3309_v48 }
 0x2ca   : > { %v2379_v33 = vpop.eup %2378  ;;  %2084 = vmatmul.mubr.msk.bf16.gmra.mrb[36].mxu1 %vm837_vm0, %v3091_v53  ;;  %v1408_v50 = vpack.c.bf16 %v2377_v37, %v2369_v55 }
 0x2cb   : > { %v2381_v2 = vpop.eup %2380  ;;  %v1407_v30 = vpack.c.bf16 %v2379_v33, %v2371_v14  ;;  %1601 = vmatprep.mubr.bf16.mxu1 %v3309_v48 }
 0x2cc   : > { %v1409_v34 = vpack.c.bf16 %v2381_v2, %v2373_v24 }
 0x2cd   : > { %1518 = vmatprep.subr.bf16.mxu0 %v1407_v30 }
 0x2ce   : > { %1571 = vmatprep.subr.bf16.mxu1 %v1409_v34  ;;  %1519 = vmatpush1.bf16.msra.mxu0 %v1406_v52 }
 0x2cf   : > { %1572 = vmatpush1.bf16.msra.mxu1 %v1408_v50 }
 0x2d1   : > { %2085 = vmatmul.mubr.msk.bf16.vlgmr.msra.gmra.mrb[40].mxu0 %vm837_vm0, %v3080_v29 }
 0x2d2   : > { %2087 = vmatmul.mubr.msk.bf16.vlgmr.msra.gmra.mrb[40].mxu1 %vm837_vm0, %v3080_v29  ;;  %1558 = vmatprep.mubr.bf16.mxu0 %v3309_v48 }
 0x2d3   : > { %1611 = vmatprep.mubr.bf16.mxu1 %v3309_v48 }
 0x2d9   : > { %2086 = vmatmul.mubr.msk.bf16.gmra.mrb[44].mxu0 %vm837_vm0, %v3091_v53 }
 0x2da   : > { %2088 = vmatmul.mubr.msk.bf16.gmra.mrb[44].mxu1 %vm837_vm0, %v3091_v53  ;;  %1728 = vmatprep.mubr.f32.mxu0 %v2513_v47 }
 0x2db   : > { %1799 = vmatprep.mubr.f32.mxu1 %v2513_v47 }
 0x393   : > { %v1444_v18 = vpop.f32.mrb[32].mxu0 }
 0x394   : > { %v1445_v1 = vadd.f32 %v1444_v18, %v3111_v56  ;;  %v1446_v29 = vpop.f32.mrb[33].mxu0 }
 0x395   : > { %v1497_v9 = vpop.f32.mrb[32].mxu1  ;;  %v1447_v48 = vadd.f32 %v1446_v29, %v3111_v56  ;;  %v1448_v40 = vpop.f32.mrb[34].mxu0 }
 0x396   : > { %v1498_v49 = vadd.f32 %v1497_v9, %v3111_v56  ;;  %v1499_v15 = vpop.f32.mrb[33].mxu1  ;;  %2382 = vtanh.f32 %v1445_v1  ;;  %v1449_v53 = vadd.f32 %v1448_v40, %v3113_v38  ;;  %v1450_v51 = vpop.f32.mrb[35].mxu0 }
 0x397   : > { %v1500_v21 = vadd.f32 %v1499_v15, %v3111_v56  ;;  %v1501_v27 = vpop.f32.mrb[34].mxu1  ;;  %v1451_v59 = vadd.f32 %v1450_v51, %v3113_v38 }
 0x398   : > { %2384 = vtanh.f32 %v1498_v49  ;;  %v1502_v43 = vadd.f32 %v1501_v27, %v3113_v38  ;;  %v1503_v44 = vpop.f32.mrb[35].mxu1 }
 0x399   : > { %2386 = vtanh.f32 %v1447_v48  ;;  %v1504_v5 = vadd.f32 %v1503_v44, %v3113_v38 }
 0x39a   : > { %2388 = vtanh.f32 %v1500_v21 }
 0x39b   : > { %2390 = vtanh.f32 %v1449_v53  ;;  %v1454_v39 = vpop.f32.mrb[36].mxu0 }
 0x39c   : > { %2392 = vtanh.f32 %v1502_v43  ;;  %v1455_v62 = vadd.f32 %v1454_v39, %v3123_v35  ;;  %v1456_v58 = vpop.f32.mrb[37].mxu0 }
 0x39d   : > { %2394 = vtanh.f32 %v1451_v59  ;;  %v1507_v22 = vpop.f32.mrb[36].mxu1  ;;  %v1457_v4 = vadd.f32 %v1456_v58, %v3123_v35  ;;  %v1458_v28 = vpop.f32.mrb[38].mxu0 }
 0x39e   : > { %2396 = vtanh.f32 %v1504_v5  ;;  %v1508_v54 = vadd.f32 %v1507_v22, %v3123_v35  ;;  %v1509_v41 = vpop.f32.mrb[37].mxu1  ;;  %v1459_v32 = vadd.f32 %v1458_v28, %v3125_v6  ;;  %v1460_v17 = vpop.f32.mrb[39].mxu0 }
 0x39f   : > { %2398 = vtanh.f32 %v1455_v62  ;;  %v1510_v10 = vadd.f32 %v1509_v41, %v3123_v35  ;;  %v1511_v20 = vpop.f32.mrb[38].mxu1  ;;  %v1461_v3 = vadd.f32 %v1460_v17, %v3125_v6 }
 0x3a0   : > { %2400 = vtanh.f32 %v1508_v54  ;;  %v1512_v57 = vadd.f32 %v1511_v20, %v3125_v6  ;;  %v1513_v11 = vpop.f32.mrb[39].mxu1  ;;  %v2383_v7 = vpop.eup %2382 }
 0x3a1   : > { %2402 = vtanh.f32 %v1457_v4  ;;  %v1514_v31 = vadd.f32 %v1513_v11, %v3125_v6  ;;  %v1654_v11 = vld [vmem:[%s3270_s3] sm:$0x7] }
 0x3a2   : > { %v2385_v60 = vpop.eup %2384  ;;  %2404 = vtanh.f32 %v1510_v10 }
 0x3a3   : > { %v2387_v36 = vpop.eup %2386  ;;  %2406 = vtanh.f32 %v1459_v32 }
 0x3a4   : > { %v2389_v8 = vpop.eup %2388  ;;  %2408 = vtanh.f32 %v1512_v57  ;;  %v1550_v23 = vpop.f32.mrb[40].mxu0 }
 0x3a5   : > { %v2391_v25 = vpop.eup %2390  ;;  %2410 = vtanh.f32 %v1461_v3  ;;  %v1551_v0 = vadd.f32 %v1550_v23, %v3111_v56  ;;  %v1603_v19 = vpop.f32.mrb[40].mxu1 }
 0x3a6   : > { %v1552_v12 = vpop.f32.mrb[41].mxu0  ;;  %v2393_v61 = vpop.eup %2392  ;;  %2412 = vtanh.f32 %v1514_v31  ;;  %v1604_v13 = vadd.f32 %v1603_v19, %v3111_v56  ;;  %v2101_v42 = vpack.c.bf16 %v2391_v25, %v2383_v7 }
 0x3a7   : > { %v1553_v46 = vadd.f32 %v1552_v12, %v3111_v56  ;;  %v1605_v45 = vpop.f32.mrb[41].mxu1  ;;  %v1554_v26 = vpop.f32.mrb[42].mxu0  ;;  %2414 = vtanh.f32 %v1551_v0  ;;  %v2109_v37 = vpack.c.bf16 %v2393_v61, %v2385_v60 }
 0x3a8   : > { %v2395_v63 = vpop.eup %2394  ;;  %v1606_v55 = vadd.f32 %v1605_v45, %v3111_v56  ;;  %v1555_v14 = vadd.f32 %v1554_v26, %v3113_v38  ;;  %v1607_v24 = vpop.f32.mrb[42].mxu1  ;;  %2416 = vtanh.f32 %v1604_v13 }
 0x3a9   : > { %v1556_v16 = vpop.f32.mrb[43].mxu0  ;;  %v2397_v52 = vpop.eup %2396  ;;  %v1608_v33 = vadd.f32 %v1607_v24, %v3113_v38  ;;  %v2099_v2 = vpack.c.bf16 %v2395_v63, %v2387_v36  ;;  %2418 = vtanh.f32 %v1553_v46 }
 0x3aa   : > { %v1609_v50 = vpop.f32.mrb[43].mxu1  ;;  %v2399_v30 = vpop.eup %2398  ;;  %v1557_v34 = vadd.f32 %v1556_v16, %v3113_v38  ;;  %v2107_v18 = vpack.c.bf16 %v2397_v52, %v2389_v8  ;;  %2420 = vtanh.f32 %v1606_v55 }
 0x3ab   : > { %v2401_v1 = vpop.eup %2400  ;;  %v1610_v56 = vadd.f32 %v1609_v50, %v3113_v38  ;;  %2100 = vmatprep.subr.bf16.mxu0 %v2099_v2  ;;  %2422 = vtanh.f32 %v1555_v14 }
 0x3ac   : > { %v2403_v9 = vpop.eup %2402  ;;  %2108 = vmatprep.subr.bf16.mxu1 %v2107_v18  ;;  %2102 = vmatpush1.bf16.msra.mxu0 %v2101_v42  ;;  %2424 = vtanh.f32 %v1608_v33  ;;  %v1560_v49 = vpop.f32.mrb[44].mxu0 }
 0x3ad   : > { %v2405_v29 = vpop.eup %2404  ;;  %2110 = vmatpush1.bf16.msra.mxu1 %v2109_v37  ;;  %2426 = vtanh.f32 %v1557_v34  ;;  %v1561_v15 = vadd.f32 %v1560_v49, %v3123_v35  ;;  %v1613_v40 = vpop.f32.mrb[44].mxu1 }
 0x3ae   : > { %v2407_v48 = vpop.eup %2406  ;;  %v1562_v21 = vpop.f32.mrb[45].mxu0  ;;  %2428 = vtanh.f32 %v1610_v56  ;;  %v1614_v27 = vadd.f32 %v1613_v40, %v3123_v35 }
 0x3af   : > { %v2409_v53 = vpop.eup %2408  ;;  %v1563_v38 = vadd.f32 %v1562_v21, %v3123_v35  ;;  %v1615_v51 = vpop.f32.mrb[45].mxu1  ;;  %v2105_v44 = vpack.c.bf16 %v2407_v48, %v2399_v30  ;;  %2430 = vtanh.f32 %v1561_v15 }
 0x3b0   : > { %v1564_v43 = vpop.f32.mrb[46].mxu0  ;;  %v2411_v59 = vpop.eup %2410  ;;  %v1616_v5 = vadd.f32 %v1615_v51, %v3123_v35  ;;  %v2113_v58 = vpack.c.bf16 %v2409_v53, %v2401_v1  ;;  %2432 = vtanh.f32 %v1614_v27 }
 0x3b1   : > { %v1565_v39 = vadd.f32 %v1564_v43, %v3125_v6  ;;  %v1617_v62 = vpop.f32.mrb[46].mxu1  ;;  %v1566_v22 = vpop.f32.mrb[47].mxu0  ;;  %v2103_v28 = vpack.c.bf16 %v2411_v59, %v2403_v9  ;;  %2434 = vtanh.f32 %v1563_v38 }
 0x3b2   : > { %v2413_v54 = vpop.eup %2412  ;;  %v1618_v4 = vadd.f32 %v1617_v62, %v3125_v6  ;;  %v1619_v41 = vpop.f32.mrb[47].mxu1  ;;  %v1567_v32 = vadd.f32 %v1566_v22, %v3125_v6  ;;  %2436 = vtanh.f32 %v1616_v5 }
 0x3b3   : > { %v2415_v10 = vpop.eup %2414  ;;  %v2111_v20 = vpack.c.bf16 %v2413_v54, %v2405_v29  ;;  %v1620_v35 = vadd.f32 %v1619_v41, %v3125_v6  ;;  %2104 = vmatprep.subr.bf16.mxu0 %v2103_v28  ;;  %2438 = vtanh.f32 %v1565_v39 }
 0x3b4   : > { %v2417_v17 = vpop.eup %2416  ;;  %2106 = vmatpush1.bf16.msra.mxu0 %v2105_v44  ;;  %2440 = vtanh.f32 %v1618_v4 }
 0x3b5   : > { %v2419_v57 = vpop.eup %2418  ;;  %2112 = vmatprep.subr.bf16.mxu1 %v2111_v20  ;;  %2442 = vtanh.f32 %v1567_v32 }
 0x3b6   : > { %v2421_v7 = vpop.eup %2420  ;;  %2114 = vmatpush1.bf16.msra.mxu1 %v2113_v58  ;;  %2444 = vtanh.f32 %v1620_v35 }
 0x3b7   : > { %v2423_v3 = vpop.eup %2422  ;;  %2089 = vmatmul.mubr.msk.f32.vlgmr.msra.gmra.mrb[48].mxu0 %vm837_vm0, %v1654_v11 }
 0x3b8   : > { %v2425_v60 = vpop.eup %2424  ;;  %v2117_v31 = vpack.c.bf16 %v2423_v3, %v2415_v10  ;;  %1870 = vmatprep.mubr.f32.mxu0 %v2513_v47 }
 0x3b9   : > { %v2427_v6 = vpop.eup %2426  ;;  %2090 = vmatmul.mubr.msk.f32.vlgmr.msra.gmra.mrb[48].mxu1 %vm837_vm0, %v1654_v11  ;;  %v2125_v36 = vpack.c.bf16 %v2425_v60, %v2417_v17 }
 0x3ba   : > { %v2429_v8 = vpop.eup %2428  ;;  %v2115_v23 = vpack.c.bf16 %v2427_v6, %v2419_v57  ;;  %1941 = vmatprep.mubr.f32.mxu1 %v2513_v47  ;;  %v1659_v47 = vpop.permute.xlu1 %1658 }
 0x3bb   : > { %v2431_v25 = vpop.eup %2430  ;;  %v2123_v0 = vpack.c.bf16 %v2429_v8, %v2421_v7 }
 0x3bc   : > { %v2433_v19 = vpop.eup %2432  ;;  %2116 = vmatprep.subr.bf16.mxu0 %v2115_v23 }
 0x3bd   : > { %v2435_v12 = vpop.eup %2434  ;;  %2124 = vmatprep.subr.bf16.mxu1 %v2123_v0  ;;  %2118 = vmatpush1.bf16.msra.mxu0 %v2117_v31 }
 0x3be   : > { %v2437_v61 = vpop.eup %2436  ;;  %2126 = vmatpush1.bf16.msra.mxu1 %v2125_v36 }
 0x3bf   : > { %v2439_v13 = vpop.eup %2438 }
 0x3c0   : > { %v2441_v46 = vpop.eup %2440  ;;  %v2121_v45 = vpack.c.bf16 %v2439_v13, %v2431_v25 }
 0x3c1   : > { %v2443_v26 = vpop.eup %2442  ;;  %v2129_v42 = vpack.c.bf16 %v2441_v46, %v2433_v19 }
 0x3c2   : > { %v2445_v63 = vpop.eup %2444  ;;  %v2119_v55 = vpack.c.bf16 %v2443_v26, %v2435_v12 }
 0x3c3   : > { %v2127_v14 = vpack.c.bf16 %v2445_v63, %v2437_v61 }
 0x3c4   : > { %2120 = vmatprep.subr.bf16.mxu0 %v2119_v55 }
 0x3c5   : > { %2128 = vmatprep.subr.bf16.mxu1 %v2127_v14  ;;  %2122 = vmatpush1.bf16.msra.mxu0 %v2121_v45 }
 0x3c6   : > { %2130 = vmatpush1.bf16.msra.mxu1 %v2129_v42 }
 0x3c8   : > { %2091 = vmatmul.mubr.msk.f32.vlgmr.msra.gmra.mrb[50].mxu0 %vm837_vm0, %v1654_v11 }
 0x3c9   : > { %2092 = vmatmul.mubr.msk.f32.vlgmr.msra.gmra.mrb[50].mxu1 %vm837_vm0, %v1654_v11 }
 0x48a   : > { %v1730_v24 = vpop.f32.mrb[48].mxu0 }
 0x48b   : > { %v1731_v16 = vadd.f32 %v1730_v24, %v1659_v47  ;;  %v1732_v52 = vpop.f32.mrb[49].mxu0 }
 0x48c   : > { %v1801_v37 = vpop.f32.mrb[48].mxu1  ;;  %v1733_v50 = vadd.f32 %v1732_v52, %v1659_v47 }
 0x48d   : > { %v1802_v33 = vadd.f32 %v1801_v37, %v1659_v47  ;;  %v1803_v2 = vpop.f32.mrb[49].mxu1 }
 0x48e   : > { %v1804_v30 = vadd.f32 %v1803_v2, %v1659_v47  ;;  %v1956_v34 = vcombine.low %v1731_v16, %v1733_v50 }
 0x490   : > { %v1957_v18 = vcombine.low %v1802_v33, %v1804_v30  ;;  %1964 = vst [vmem:[%s245_s15] sm:$0x77] %v1956_v34 }
 0x492   : > { %1965 = vst [vmem:[%s245_s15 + $0x8] sm:$0x77] %v1957_v18 }
 0x49b   : > { %v1872_v1 = vpop.f32.mrb[50].mxu0 }
 0x49c   : > { %v1873_v56 = vadd.f32 %v1872_v1, %v1659_v47  ;;  %v1943_v9 = vpop.f32.mrb[50].mxu1  ;;  %v1874_v29 = vpop.f32.mrb[51].mxu0 }
 0x49d   : > { %v1944_v49 = vadd.f32 %v1943_v9, %v1659_v47  ;;  %v1875_v48 = vadd.f32 %v1874_v29, %v1659_v47  ;;  %v1945_v15 = vpop.f32.mrb[51].mxu1 }
 0x49e   : > { %v1946_v40 = vadd.f32 %v1945_v15, %v1659_v47 }
 0x49f   : > { %v1958_v21 = vcombine.low %v1873_v56, %v1875_v48 }
 0x4a0   : > { %v1959_v53 = vcombine.low %v1944_v49, %v1946_v40 }
 0x4a1   : > { %1966 = vst [vmem:[%s245_s15 + $0x10] sm:$0x77] %v1958_v21 }
 0x4a2   : > { %1967 = vst [vmem:[%s245_s15 + $0x18] sm:$0x77] %v1959_v53 }
 0x4a3   : > { %2459 = shalt.err (!%p2456_p3)
}
 0x4a4   : > { %s2460_s10 = scalar_lea.hbm %s3223_s20, 512  ;;  %s2464_s13 = scalar_lea.hbm %s3273_s6, 4096 }
 0x4a5   : > { %p2461_p4 = scmp.ne.s32.totalorder %s3223_s20, %s2460_s10  ;;  %p2465_p9 = scmp.lt.u32.totalorder %s3223_s20, %s3273_s6 }
 0x4a6   : > { %p2466_p10 = scmp.lt.u32.totalorder %s2464_s13, %s2460_s10  ;;  %p2468_p12 = scmp.lt.u32.totalorder %s2460_s10, %s3223_s20 }
 0x4a7   : > { %p2462_p7 = pnand %p2461_p4, %p2588_p5 }
 0x4a8   : > { %p2467_p11 = por %p2466_p10, %p2465_p9 }
 0x4a9   : > { %p2463_p8 = pneg %p2462_p7 }
 0x4aa   : > { %p2469_p13 = por %p2468_p12, %p2467_p11 }
 0x4ac   : > { %p2470_p0 = pnand %p2469_p13, %p2463_p8 }
 0x4ae   : > { %2473 = shalt.err (!%p2470_p0)
}
 0x4af   : > { %2131 = dma.vmem_to_hbm [thread:$0]  (%p2588_p5), %s3225_s17, 512, %s3223_s20, %s1969_s26  }
 0x4b0 PF: > { %p2137_p1 = scmp.ge.s32.totalorder %s2508_s24, 2  ;;  %s1995_s16 = sand.u32 1, %s2496_s21  }
 0x4b1   : > { %s1996_s18 = scalar_lea.sflag [#allocation3], %s1995_s16 }
 0x4b2   : > { %p2134_p2 = pnand %p2137_p1, %p2592_p6 }
 0x4b4   : > { %2491 = dma.done.wait (!%p2134_p2), %s1996_s18, 512  }
 0x4b5   : > { %2493 = vsyncadd (!%p2134_p2), %s1996_s18, 4294966784  ;;  %p16_p3 = scmp.ge.s32.totalorder %s2575_s27, 10   ;;  %s3310_s21 = smov %s2500_s22 }
 0x4b6   : > { %s3311_s22 = smov %s2504_s23  ;;  %s3312_s23 = smov %s2586_s30 }
 0x4b7   : > { %s3313_s24 = smov %s2575_s27  ;;  %18 = sbr.rel (!%p16_p3) target bundleno = 3 (0x3), region = 82 }
 0x4be   :  { %2001 = vsyncpa [#allocation3], 1 }
 0x4bf   :  { %2003 = vsyncpa [#allocation3 + $0x1], 1 }

</bundles_post_ra>
